<compile_context>
chip_gen: v6e
topology: v6e:2x2x1
jax: 0.10.0
libtpu: 0.0.40
codegen_flags: <defaults>
</compile_context>

<pallas_src>
import functools

import numpy as np
import jax
import jax.numpy as jnp
from jax.experimental import pallas as pl
from jax.experimental.pallas import tpu as pltpu

_EPS = 1e-5
_N_HEADS = 8
_HEAD_DIM = 32
_QKV_DIM = _N_HEADS * _HEAD_DIM  # 256, fixed by the PyTorch module


def _layer_norm(x, gamma, beta):
    mu = jnp.mean(x, axis=-1, keepdims=True)
    var = jnp.mean((x - mu) ** 2, axis=-1, keepdims=True)
    return (x - mu) * jax.lax.rsqrt(var + _EPS) * gamma + beta


# --------------------------------------------------------------------------- #
# Fused kernel: LN(input) -> datalayer -> +pos_emb -> Attention block ->
#               grouped mean -> QNet MLP
# --------------------------------------------------------------------------- #
def _agent1_fused_kernel(
        x_ref, ln_in_g_ref, ln_in_b_ref, w_data_ref, b_data_ref, pe_ref,
        w_qkv_ref, b_qkv_ref, w3_ref, b3_ref, ln_att_g_ref, ln_att_b_ref,
        w1_ref, b1_ref, avg_ref, w_fc1_ref, b_fc1_ref, w_out_ref, b_out_ref,
        mean_ref, logits_ref):
    # ---- stage 1: LayerNorm(input) -> datalayer -> nan->0 -> + pos_emb ---- #
    x = x_ref[...]                                             # (N, data_nums)
    xn = _layer_norm(x, ln_in_g_ref[...], ln_in_b_ref[...])
    pos_data = jnp.dot(xn, w_data_ref[...],
                       preferred_element_type=jnp.float32) + b_data_ref[...]
    pos_data = jnp.where(jnp.isnan(pos_data), 0.0, pos_data)
    pos_data = pos_data + pe_ref[...]                          # (N, d_model)

    # ---- stage 2: multi-head attention + proj + 2x residual LayerNorm ----- #
    # Single fused QKV matmul; the 1/sqrt(32) scale is already folded into the
    # q-part of w_qkv/b_qkv on the host.
    qkv = jnp.dot(pos_data, w_qkv_ref[...],
                  preferred_element_type=jnp.float32) + b_qkv_ref[...]  # (N, 768)
    q = qkv[:, 0:_QKV_DIM]                    # 256-lane-aligned slices
    k = qkv[:, _QKV_DIM:2 * _QKV_DIM]
    v = qkv[:, 2 * _QKV_DIM:3 * _QKV_DIM]

    w3 = w3_ref[...]                                           # (256, d_model)
    n = x.shape[0]
    d_model = w3.shape[1]

    # Accumulated output projection: no (N, 256) context concatenate.
    out_acc = jnp.zeros((n, d_model), jnp.float32)
    for h in range(_N_HEADS):                                  # static 8-head loop
        lo = h * _HEAD_DIM
        qh = q[:, lo:lo + _HEAD_DIM]                           # (N, 32) -> MXU
        kh = k[:, lo:lo + _HEAD_DIM]
        vh = v[:, lo:lo + _HEAD_DIM]
        s = jax.lax.dot_general(qh, kh, (((1,), (1,)), ((), ())),
                                preferred_element_type=jnp.float32)   # (N, N)
        s = s - jnp.max(s, axis=-1, keepdims=True)
        e = jnp.exp(s)
        inv_denom = pl.reciprocal(jnp.sum(e, axis=-1, keepdims=True), approx=True)
        attn = e * inv_denom
        ctx_h = jnp.dot(attn, vh, preferred_element_type=jnp.float32)  # (N, 32)
        out_acc = out_acc + jnp.dot(ctx_h, w3[lo:lo + _HEAD_DIM, :],
                                    preferred_element_type=jnp.float32)
    out = out_acc + b3_ref[...]                                # (N, d_model)

    ln_g = ln_att_g_ref[...]
    ln_b = ln_att_b_ref[...]
    enc = _layer_norm(pos_data + out, ln_g, ln_b)
    out1 = jnp.dot(enc, w1_ref[...],
                   preferred_element_type=jnp.float32) + b1_ref[...]
    emb = _layer_norm(enc + out1, ln_g, ln_b)
    emb = jnp.where(jnp.isnan(emb), 0.0, emb)                  # (N, d_model)

    # ---- stage 3: grouped mean (averaging matmul) + QNet_generation MLP ---- #
    mean = jnp.dot(avg_ref[...], emb,
                   preferred_element_type=jnp.float32)         # (F, d_model)
    mean_ref[...] = mean
    hdn = jnp.dot(mean, w_fc1_ref[...],
                  preferred_element_type=jnp.float32) + b_fc1_ref[...]
    hdn = jnp.maximum(hdn, 0.0)
    logits = jnp.dot(hdn, w_out_ref[...],
                     preferred_element_type=jnp.float32) + b_out_ref[...]
    logits_ref[...] = jnp.where(jnp.isnan(logits), 0.0, logits)


# --------------------------------------------------------------------------- #
# Host-side constants (built once per shape) and jitted wrapper
# --------------------------------------------------------------------------- #
@functools.lru_cache(maxsize=None)
def sinusoidal_pos_emb(n, d_model):
    pos = np.arange(n, dtype=np.float32)[:, None]
    i = np.arange(d_model, dtype=np.float32)[None, :]
    angle = pos / np.power(10000.0, (2.0 * np.floor(i / 2.0)) / d_model)
    pe = np.where(np.arange(d_model)[None, :] % 2 == 0,
                  np.sin(angle), np.cos(angle))
    return jnp.asarray(pe, jnp.float32)


@functools.lru_cache(maxsize=None)
def make_avg_matrix(n, feature_nums):
    """Row-averaging matrix reproducing Agent1.mean() group semantics."""
    num_groups = n // feature_nums
    gid = np.minimum(np.arange(n) // num_groups, feature_nums - 1)
    onehot = (gid[None, :] == np.arange(feature_nums)[:, None]).astype(np.float32)
    counts = onehot.sum(axis=1, keepdims=True)
    return jnp.asarray(onehot / counts, jnp.float32)


def _vmem_spec():
    return pl.BlockSpec(memory_space=pltpu.MemorySpace.VMEM)


@jax.jit
def _forward_jit(x, pos_emb, avg, p):
    n, _ = x.shape
    d_model = p['w_data'].shape[1]
    feature_nums = avg.shape[0]
    nums = p['w_out'].shape[1]
    mean, logits = pl.pallas_call(
        _agent1_fused_kernel,
        out_shape=(jax.ShapeDtypeStruct((feature_nums, d_model), jnp.float32),
                   jax.ShapeDtypeStruct((feature_nums, nums), jnp.float32)),
        in_specs=[_vmem_spec() for _ in range(19)],
        out_specs=(_vmem_spec(), _vmem_spec()),
    )(x, p['ln_in_g'], p['ln_in_b'], p['w_data'], p['b_data'], pos_emb,
      p['w_qkv'], p['b_qkv'], p['w3'], p['b3'], p['ln_att_g'], p['ln_att_b'],
      p['w1'], p['b1'], avg, p['w_fc1'], p['b_fc1'], p['w_out'], p['b_out'])
    return logits, mean


def agent1_forward(params, x, feature_nums, for_next=False, con_or_dis=None):
    """x: (N, data_nums) float32. Returns (generation_logits, encoder_mean)."""
    n, _ = x.shape
    d_model = params['w_data'].shape[1]

    pos_emb = sinusoidal_pos_emb(n, d_model)            # cached per shape
    avg = make_avg_matrix(n, feature_nums)               # cached per shape
    net = params['target_net'] if for_next else params['eval_net']

    flat = {
        'ln_in_g': params['ln_in_g'], 'ln_in_b': params['ln_in_b'],
        'w_data': params['w_data'], 'b_data': params['b_data'],
        'w_qkv': params['w_qkv'], 'b_qkv': params['b_qkv'],
        'w3': params['w3'], 'b3': params['b3'],
        'ln_att_g': params['ln_att_g'], 'ln_att_b': params['ln_att_b'],
        'w1': params['w1'], 'b1': params['b1'],
        'w_fc1': net['w_fc1'], 'b_fc1': net['b_fc1'],
        'w_out': net['w_out'], 'b_out': net['b_out'],
    }
    return _forward_jit(x, pos_emb, avg, flat)


# --------------------------------------------------------------------------- #
# Deterministic parameter init mirroring the PyTorch module's init scheme
# --------------------------------------------------------------------------- #
def init_params(key, data_nums, d_model, hidden_dim, nums):
    ks = jax.random.split(key, 16)

    def lin(k, fan_in, fan_out):
        # PyTorch nn.Linear default: U(-1/sqrt(fan_in), 1/sqrt(fan_in))
        bound = 1.0 / np.sqrt(fan_in)
        kw, kb = jax.random.split(k)
        w = jax.random.uniform(kw, (fan_in, fan_out), jnp.float32, -bound, bound)
        b = jax.random.uniform(kb, (1, fan_out), jnp.float32, -bound, bound)
        return w, b

    p = {}
    p['ln_in_g'] = jnp.ones((1, data_nums), jnp.float32)
    p['ln_in_b'] = jnp.zeros((1, data_nums), jnp.float32)
    p['w_data'], p['b_data'] = lin(ks[0], data_nums, d_model)

    wq, bq = lin(ks[1], d_model, _QKV_DIM)
    wk, bk = lin(ks[2], d_model, _QKV_DIM)
    wv, bv = lin(ks[3], d_model, _QKV_DIM)
    # Fuse QKV into one weight; fold the 1/sqrt(32) attention scale into q.
    inv_scale = np.float32(1.0 / np.sqrt(float(_HEAD_DIM)))
    p['w_qkv'] = jnp.concatenate([wq * inv_scale, wk, wv], axis=1)  # (d_model, 768)
    p['b_qkv'] = jnp.concatenate([bq * inv_scale, bk, bv], axis=1)  # (1, 768)

    p['w3'], p['b3'] = lin(ks[4], _QKV_DIM, d_model)
    p['w1'], p['b1'] = lin(ks[5], d_model, d_model)
    # NOTE: both LayerNorms inside Attention are the same module in the source.
    p['ln_att_g'] = jnp.ones((1, d_model), jnp.float32)
    p['ln_att_b'] = jnp.zeros((1, d_model), jnp.float32)

    def qnet(k):
        k1, k2, k3 = jax.random.split(k, 3)
        # fc1: fanin_init on weight, default bias
        v = 1.0 / np.sqrt(d_model)
        w1 = jax.random.uniform(k1, (d_model, hidden_dim), jnp.float32, -v, v)
        b1 = jax.random.uniform(k2, (1, hidden_dim), jnp.float32, -v, v)
        # out: weight ~ N(-init_w, init_w) with init_w=0.1, default bias
        w2 = -0.1 + 0.1 * jax.random.normal(k3, (hidden_dim, nums), jnp.float32)
        bb = 1.0 / np.sqrt(hidden_dim)
        b2 = jax.random.uniform(jax.random.fold_in(k3, 1), (1, nums),
                                jnp.float32, -bb, bb)
        return {'w_fc1': w1, 'b_fc1': b1, 'w_out': w2, 'b_out': b2}

    p['eval_net'] = qnet(ks[6])
    p['target_net'] = qnet(ks[7])
    return p


if __name__ == "__main__":
    # Small, deterministic example shapes consistent with the module:
    #   input: (N=16, data_nums=32), d_model=128, hidden_dim=128,
    #   feature_nums=5, nums = max(operations_c=6, operations_d=4) = 6
    N, DATA_NUMS, D_MODEL, HIDDEN, FEATURE_NUMS = 16, 32, 128, 128, 5
    OPERATIONS_C, OPERATIONS_D = 6, 4
    NUMS = max(OPERATIONS_C, OPERATIONS_D)

    key = jax.random.PRNGKey(0)
    k_param, k_x = jax.random.split(key)
    params = init_params(k_param, DATA_NUMS, D_MODEL, HIDDEN, NUMS)
    x = jax.random.normal(k_x, (N, DATA_NUMS), jnp.float32)

    logits, encoder_mean = agent1_forward(params, x, FEATURE_NUMS,
                                          for_next=False, con_or_dis=None)
    jax.block_until_ready((logits, encoder_mean))

    assert logits.shape == (FEATURE_NUMS, NUMS)
    assert encoder_mean.shape == (FEATURE_NUMS, D_MODEL)
    assert bool(jnp.all(jnp.isfinite(logits)))
    assert bool(jnp.all(jnp.isfinite(encoder_mean)))
    print("KERNEL_OK")
</pallas_src>

<mosaic_0001>
module attributes {stable_mosaic.version = 11 : i64} {
  func.func @_agent1_fused_kernel(%arg0: memref<16x32xf32, #tpu.memory_space<vmem>>, %arg1: memref<1x32xf32, #tpu.memory_space<vmem>>, %arg2: memref<1x32xf32, #tpu.memory_space<vmem>>, %arg3: memref<32x128xf32, #tpu.memory_space<vmem>>, %arg4: memref<1x128xf32, #tpu.memory_space<vmem>>, %arg5: memref<16x128xf32, #tpu.memory_space<vmem>>, %arg6: memref<128x768xf32, #tpu.memory_space<vmem>>, %arg7: memref<1x768xf32, #tpu.memory_space<vmem>>, %arg8: memref<256x128xf32, #tpu.memory_space<vmem>>, %arg9: memref<1x128xf32, #tpu.memory_space<vmem>>, %arg10: memref<1x128xf32, #tpu.memory_space<vmem>>, %arg11: memref<1x128xf32, #tpu.memory_space<vmem>>, %arg12: memref<128x128xf32, #tpu.memory_space<vmem>>, %arg13: memref<1x128xf32, #tpu.memory_space<vmem>>, %arg14: memref<5x16xf32, #tpu.memory_space<vmem>>, %arg15: memref<128x128xf32, #tpu.memory_space<vmem>>, %arg16: memref<1x128xf32, #tpu.memory_space<vmem>>, %arg17: memref<128x6xf32, #tpu.memory_space<vmem>>, %arg18: memref<1x6xf32, #tpu.memory_space<vmem>>, %arg19: memref<5x128xf32, #tpu.memory_space<vmem>>, %arg20: memref<5x6xf32, #tpu.memory_space<vmem>>) attributes {dimension_semantics = [], scalar_prefetch = 0 : i64, scratch_operands = 0 : i64, tpu.core_type = #tpu.core_type<tc>} {
    %c0 = arith.constant 0 : index
    %c0_0 = arith.constant 0 : index
    %0 = vector.load %arg0[%c0, %c0_0] : memref<16x32xf32, #tpu.memory_space<vmem>>, vector<16x32xf32>
    %c0_1 = arith.constant 0 : index
    %c0_2 = arith.constant 0 : index
    %1 = vector.load %arg1[%c0_1, %c0_2] : memref<1x32xf32, #tpu.memory_space<vmem>>, vector<1x32xf32>
    %c0_3 = arith.constant 0 : index
    %c0_4 = arith.constant 0 : index
    %2 = vector.load %arg2[%c0_3, %c0_4] : memref<1x32xf32, #tpu.memory_space<vmem>>, vector<1x32xf32>
    %cst = arith.constant dense<0.000000e+00> : vector<16xf32>
    %3 = vector.multi_reduction <add>, %0, %cst [1] : vector<16x32xf32> to vector<16xf32>
    %4 = vector.shape_cast %3 : vector<16xf32> to vector<16x1xf32>
    %cst_5 = arith.constant 3.200000e+01 : f32
    %5 = vector.broadcast %cst_5 : f32 to vector<16x1xf32>
    %6 = arith.divf %4, %5 : vector<16x1xf32>
    %7 = vector.broadcast %6 : vector<16x1xf32> to vector<16x32xf32>
    %8 = arith.subf %0, %7 : vector<16x32xf32>
    %9 = arith.mulf %8, %8 : vector<16x32xf32>
    %cst_6 = arith.constant dense<0.000000e+00> : vector<16xf32>
    %10 = vector.multi_reduction <add>, %9, %cst_6 [1] : vector<16x32xf32> to vector<16xf32>
    %11 = vector.shape_cast %10 : vector<16xf32> to vector<16x1xf32>
    %cst_7 = arith.constant 3.200000e+01 : f32
    %12 = vector.broadcast %cst_7 : f32 to vector<16x1xf32>
    %13 = arith.divf %11, %12 : vector<16x1xf32>
    %14 = vector.broadcast %6 : vector<16x1xf32> to vector<16x32xf32>
    %15 = arith.subf %0, %14 : vector<16x32xf32>
    %cst_8 = arith.constant 9.99999974E-6 : f32
    %16 = vector.broadcast %cst_8 : f32 to vector<16x1xf32>
    %17 = arith.addf %13, %16 : vector<16x1xf32>
    %18 = math.rsqrt %17 : vector<16x1xf32>
    %19 = vector.broadcast %18 : vector<16x1xf32> to vector<16x32xf32>
    %20 = arith.mulf %15, %19 : vector<16x32xf32>
    %21 = vector.broadcast %1 : vector<1x32xf32> to vector<16x32xf32>
    %22 = arith.mulf %20, %21 : vector<16x32xf32>
    %23 = vector.broadcast %2 : vector<1x32xf32> to vector<16x32xf32>
    %24 = arith.addf %22, %23 : vector<16x32xf32>
    %c0_9 = arith.constant 0 : index
    %c0_10 = arith.constant 0 : index
    %25 = vector.load %arg3[%c0_9, %c0_10] : memref<32x128xf32, #tpu.memory_space<vmem>>, vector<32x128xf32>
    %cst_11 = arith.constant dense<0.000000e+00> : vector<16x128xf32>
    %26 = tpu.matmul %24, %25, %cst_11 {dimension_numbers = #tpu.dot_dimension_numbers<[1], [0], [0], [1], [0, 0, 1, 1], [], []>} : vector<16x32xf32>, vector<32x128xf32>, vector<16x128xf32> -> vector<16x128xf32>
    %c0_12 = arith.constant 0 : index
    %c0_13 = arith.constant 0 : index
    %27 = vector.load %arg4[%c0_12, %c0_13] : memref<1x128xf32, #tpu.memory_space<vmem>>, vector<1x128xf32>
    %28 = vector.broadcast %27 : vector<1x128xf32> to vector<16x128xf32>
    %29 = arith.addf %26, %28 : vector<16x128xf32>
    %30 = arith.cmpf one, %29, %29 : vector<16x128xf32>
    %cst_14 = arith.constant 0.000000e+00 : f32
    %31 = vector.broadcast %cst_14 : f32 to vector<16x128xf32>
    %32 = arith.select %30, %31, %29 : vector<16x128xi1>, vector<16x128xf32>
    %c0_15 = arith.constant 0 : index
    %c0_16 = arith.constant 0 : index
    %33 = vector.load %arg5[%c0_15, %c0_16] : memref<16x128xf32, #tpu.memory_space<vmem>>, vector<16x128xf32>
    %34 = arith.addf %32, %33 : vector<16x128xf32>
    %c0_17 = arith.constant 0 : index
    %c0_18 = arith.constant 0 : index
    %35 = vector.load %arg6[%c0_17, %c0_18] : memref<128x768xf32, #tpu.memory_space<vmem>>, vector<128x768xf32>
    %cst_19 = arith.constant dense<0.000000e+00> : vector<16x768xf32>
    %36 = tpu.matmul %34, %35, %cst_19 {dimension_numbers = #tpu.dot_dimension_numbers<[1], [0], [0], [1], [0, 0, 1, 1], [], []>} : vector<16x128xf32>, vector<128x768xf32>, vector<16x768xf32> -> vector<16x768xf32>
    %c0_20 = arith.constant 0 : index
    %c0_21 = arith.constant 0 : index
    %37 = vector.load %arg7[%c0_20, %c0_21] : memref<1x768xf32, #tpu.memory_space<vmem>>, vector<1x768xf32>
    %38 = vector.broadcast %37 : vector<1x768xf32> to vector<16x768xf32>
    %39 = arith.addf %36, %38 : vector<16x768xf32>
    %40 = vector.extract_strided_slice %39 {offsets = [0, 0], sizes = [16, 256], strides = [1, 1]} : vector<16x768xf32> to vector<16x256xf32>
    %41 = vector.extract_strided_slice %39 {offsets = [0, 256], sizes = [16, 256], strides = [1, 1]} : vector<16x768xf32> to vector<16x256xf32>
    %42 = vector.extract_strided_slice %39 {offsets = [0, 512], sizes = [16, 256], strides = [1, 1]} : vector<16x768xf32> to vector<16x256xf32>
    %c0_22 = arith.constant 0 : index
    %c0_23 = arith.constant 0 : index
    %43 = vector.load %arg8[%c0_22, %c0_23] : memref<256x128xf32, #tpu.memory_space<vmem>>, vector<256x128xf32>
    %cst_24 = arith.constant 0.000000e+00 : f32
    %44 = vector.broadcast %cst_24 : f32 to vector<16x128xf32>
    %45 = vector.extract_strided_slice %40 {offsets = [0, 0], sizes = [16, 32], strides = [1, 1]} : vector<16x256xf32> to vector<16x32xf32>
    %46 = vector.extract_strided_slice %41 {offsets = [0, 0], sizes = [16, 32], strides = [1, 1]} : vector<16x256xf32> to vector<16x32xf32>
    %47 = vector.extract_strided_slice %42 {offsets = [0, 0], sizes = [16, 32], strides = [1, 1]} : vector<16x256xf32> to vector<16x32xf32>
    %cst_25 = arith.constant dense<0.000000e+00> : vector<16x16xf32>
    %48 = tpu.matmul %45, %46, %cst_25 {dimension_numbers = #tpu.dot_dimension_numbers<[1], [1], [0], [0], [0, 0, 1, 0], [], []>} : vector<16x32xf32>, vector<16x32xf32>, vector<16x16xf32> -> vector<16x16xf32>
    %cst_26 = arith.constant dense<0xFF800000> : vector<16xf32>
    %49 = vector.multi_reduction <maximumf>, %48, %cst_26 [1] : vector<16x16xf32> to vector<16xf32>
    %50 = vector.shape_cast %49 : vector<16xf32> to vector<16x1xf32>
    %51 = vector.broadcast %50 : vector<16x1xf32> to vector<16x16xf32>
    %52 = arith.subf %48, %51 : vector<16x16xf32>
    %53 = math.exp %52 : vector<16x16xf32>
    %cst_27 = arith.constant dense<0.000000e+00> : vector<16xf32>
    %54 = vector.multi_reduction <add>, %53, %cst_27 [1] : vector<16x16xf32> to vector<16xf32>
    %55 = vector.shape_cast %54 : vector<16xf32> to vector<16x1xf32>
    %56 = tpu.reciprocal %55 {approx = true} : vector<16x1xf32> -> vector<16x1xf32>
    %57 = vector.broadcast %56 : vector<16x1xf32> to vector<16x16xf32>
    %58 = arith.mulf %53, %57 : vector<16x16xf32>
    %cst_28 = arith.constant dense<0.000000e+00> : vector<16x32xf32>
    %59 = tpu.matmul %58, %47, %cst_28 {dimension_numbers = #tpu.dot_dimension_numbers<[1], [0], [0], [1], [0, 0, 1, 1], [], []>} : vector<16x16xf32>, vector<16x32xf32>, vector<16x32xf32> -> vector<16x32xf32>
    %60 = vector.extract_strided_slice %43 {offsets = [0, 0], sizes = [32, 128], strides = [1, 1]} : vector<256x128xf32> to vector<32x128xf32>
    %cst_29 = arith.constant dense<0.000000e+00> : vector<16x128xf32>
    %61 = tpu.matmul %59, %60, %cst_29 {dimension_numbers = #tpu.dot_dimension_numbers<[1], [0], [0], [1], [0, 0, 1, 1], [], []>} : vector<16x32xf32>, vector<32x128xf32>, vector<16x128xf32> -> vector<16x128xf32>
    %62 = arith.addf %44, %61 : vector<16x128xf32>
    %63 = vector.extract_strided_slice %40 {offsets = [0, 32], sizes = [16, 32], strides = [1, 1]} : vector<16x256xf32> to vector<16x32xf32>
    %64 = vector.extract_strided_slice %41 {offsets = [0, 32], sizes = [16, 32], strides = [1, 1]} : vector<16x256xf32> to vector<16x32xf32>
    %65 = vector.extract_strided_slice %42 {offsets = [0, 32], sizes = [16, 32], strides = [1, 1]} : vector<16x256xf32> to vector<16x32xf32>
    %cst_30 = arith.constant dense<0.000000e+00> : vector<16x16xf32>
    %66 = tpu.matmul %63, %64, %cst_30 {dimension_numbers = #tpu.dot_dimension_numbers<[1], [1], [0], [0], [0, 0, 1, 0], [], []>} : vector<16x32xf32>, vector<16x32xf32>, vector<16x16xf32> -> vector<16x16xf32>
    %cst_31 = arith.constant dense<0xFF800000> : vector<16xf32>
    %67 = vector.multi_reduction <maximumf>, %66, %cst_31 [1] : vector<16x16xf32> to vector<16xf32>
    %68 = vector.shape_cast %67 : vector<16xf32> to vector<16x1xf32>
    %69 = vector.broadcast %68 : vector<16x1xf32> to vector<16x16xf32>
    %70 = arith.subf %66, %69 : vector<16x16xf32>
    %71 = math.exp %70 : vector<16x16xf32>
    %cst_32 = arith.constant dense<0.000000e+00> : vector<16xf32>
    %72 = vector.multi_reduction <add>, %71, %cst_32 [1] : vector<16x16xf32> to vector<16xf32>
    %73 = vector.shape_cast %72 : vector<16xf32> to vector<16x1xf32>
    %74 = tpu.reciprocal %73 {approx = true} : vector<16x1xf32> -> vector<16x1xf32>
    %75 = vector.broadcast %74 : vector<16x1xf32> to vector<16x16xf32>
    %76 = arith.mulf %71, %75 : vector<16x16xf32>
    %cst_33 = arith.constant dense<0.000000e+00> : vector<16x32xf32>
    %77 = tpu.matmul %76, %65, %cst_33 {dimension_numbers = #tpu.dot_dimension_numbers<[1], [0], [0], [1], [0, 0, 1, 1], [], []>} : vector<16x16xf32>, vector<16x32xf32>, vector<16x32xf32> -> vector<16x32xf32>
    %78 = vector.extract_strided_slice %43 {offsets = [32, 0], sizes = [32, 128], strides = [1, 1]} : vector<256x128xf32> to vector<32x128xf32>
    %cst_34 = arith.constant dense<0.000000e+00> : vector<16x128xf32>
    %79 = tpu.matmul %77, %78, %cst_34 {dimension_numbers = #tpu.dot_dimension_numbers<[1], [0], [0], [1], [0, 0, 1, 1], [], []>} : vector<16x32xf32>, vector<32x128xf32>, vector<16x128xf32> -> vector<16x128xf32>
    %80 = arith.addf %62, %79 : vector<16x128xf32>
    %81 = vector.extract_strided_slice %40 {offsets = [0, 64], sizes = [16, 32], strides = [1, 1]} : vector<16x256xf32> to vector<16x32xf32>
    %82 = vector.extract_strided_slice %41 {offsets = [0, 64], sizes = [16, 32], strides = [1, 1]} : vector<16x256xf32> to vector<16x32xf32>
    %83 = vector.extract_strided_slice %42 {offsets = [0, 64], sizes = [16, 32], strides = [1, 1]} : vector<16x256xf32> to vector<16x32xf32>
    %cst_35 = arith.constant dense<0.000000e+00> : vector<16x16xf32>
    %84 = tpu.matmul %81, %82, %cst_35 {dimension_numbers = #tpu.dot_dimension_numbers<[1], [1], [0], [0], [0, 0, 1, 0], [], []>} : vector<16x32xf32>, vector<16x32xf32>, vector<16x16xf32> -> vector<16x16xf32>
    %cst_36 = arith.constant dense<0xFF800000> : vector<16xf32>
    %85 = vector.multi_reduction <maximumf>, %84, %cst_36 [1] : vector<16x16xf32> to vector<16xf32>
    %86 = vector.shape_cast %85 : vector<16xf32> to vector<16x1xf32>
    %87 = vector.broadcast %86 : vector<16x1xf32> to vector<16x16xf32>
    %88 = arith.subf %84, %87 : vector<16x16xf32>
    %89 = math.exp %88 : vector<16x16xf32>
    %cst_37 = arith.constant dense<0.000000e+00> : vector<16xf32>
    %90 = vector.multi_reduction <add>, %89, %cst_37 [1] : vector<16x16xf32> to vector<16xf32>
    %91 = vector.shape_cast %90 : vector<16xf32> to vector<16x1xf32>
    %92 = tpu.reciprocal %91 {approx = true} : vector<16x1xf32> -> vector<16x1xf32>
    %93 = vector.broadcast %92 : vector<16x1xf32> to vector<16x16xf32>
    %94 = arith.mulf %89, %93 : vector<16x16xf32>
    %cst_38 = arith.constant dense<0.000000e+00> : vector<16x32xf32>
    %95 = tpu.matmul %94, %83, %cst_38 {dimension_numbers = #tpu.dot_dimension_numbers<[1], [0], [0], [1], [0, 0, 1, 1], [], []>} : vector<16x16xf32>, vector<16x32xf32>, vector<16x32xf32> -> vector<16x32xf32>
    %96 = vector.extract_strided_slice %43 {offsets = [64, 0], sizes = [32, 128], strides = [1, 1]} : vector<256x128xf32> to vector<32x128xf32>
    %cst_39 = arith.constant dense<0.000000e+00> : vector<16x128xf32>
    %97 = tpu.matmul %95, %96, %cst_39 {dimension_numbers = #tpu.dot_dimension_numbers<[1], [0], [0], [1], [0, 0, 1, 1], [], []>} : vector<16x32xf32>, vector<32x128xf32>, vector<16x128xf32> -> vector<16x128xf32>
    %98 = arith.addf %80, %97 : vector<16x128xf32>
    %99 = vector.extract_strided_slice %40 {offsets = [0, 96], sizes = [16, 32], strides = [1, 1]} : vector<16x256xf32> to vector<16x32xf32>
    %100 = vector.extract_strided_slice %41 {offsets = [0, 96], sizes = [16, 32], strides = [1, 1]} : vector<16x256xf32> to vector<16x32xf32>
    %101 = vector.extract_strided_slice %42 {offsets = [0, 96], sizes = [16, 32], strides = [1, 1]} : vector<16x256xf32> to vector<16x32xf32>
    %cst_40 = arith.constant dense<0.000000e+00> : vector<16x16xf32>
    %102 = tpu.matmul %99, %100, %cst_40 {dimension_numbers = #tpu.dot_dimension_numbers<[1], [1], [0], [0], [0, 0, 1, 0], [], []>} : vector<16x32xf32>, vector<16x32xf32>, vector<16x16xf32> -> vector<16x16xf32>
    %cst_41 = arith.constant dense<0xFF800000> : vector<16xf32>
    %103 = vector.multi_reduction <maximumf>, %102, %cst_41 [1] : vector<16x16xf32> to vector<16xf32>
    %104 = vector.shape_cast %103 : vector<16xf32> to vector<16x1xf32>
    %105 = vector.broadcast %104 : vector<16x1xf32> to vector<16x16xf32>
    %106 = arith.subf %102, %105 : vector<16x16xf32>
    %107 = math.exp %106 : vector<16x16xf32>
    %cst_42 = arith.constant dense<0.000000e+00> : vector<16xf32>
    %108 = vector.multi_reduction <add>, %107, %cst_42 [1] : vector<16x16xf32> to vector<16xf32>
    %109 = vector.shape_cast %108 : vector<16xf32> to vector<16x1xf32>
    %110 = tpu.reciprocal %109 {approx = true} : vector<16x1xf32> -> vector<16x1xf32>
    %111 = vector.broadcast %110 : vector<16x1xf32> to vector<16x16xf32>
    %112 = arith.mulf %107, %111 : vector<16x16xf32>
    %cst_43 = arith.constant dense<0.000000e+00> : vector<16x32xf32>
    %113 = tpu.matmul %112, %101, %cst_43 {dimension_numbers = #tpu.dot_dimension_numbers<[1], [0], [0], [1], [0, 0, 1, 1], [], []>} : vector<16x16xf32>, vector<16x32xf32>, vector<16x32xf32> -> vector<16x32xf32>
    %114 = vector.extract_strided_slice %43 {offsets = [96, 0], sizes = [32, 128], strides = [1, 1]} : vector<256x128xf32> to vector<32x128xf32>
    %cst_44 = arith.constant dense<0.000000e+00> : vector<16x128xf32>
    %115 = tpu.matmul %113, %114, %cst_44 {dimension_numbers = #tpu.dot_dimension_numbers<[1], [0], [0], [1], [0, 0, 1, 1], [], []>} : vector<16x32xf32>, vector<32x128xf32>, vector<16x128xf32> -> vector<16x128xf32>
    %116 = arith.addf %98, %115 : vector<16x128xf32>
    %117 = vector.extract_strided_slice %40 {offsets = [0, 128], sizes = [16, 32], strides = [1, 1]} : vector<16x256xf32> to vector<16x32xf32>
    %118 = vector.extract_strided_slice %41 {offsets = [0, 128], sizes = [16, 32], strides = [1, 1]} : vector<16x256xf32> to vector<16x32xf32>
    %119 = vector.extract_strided_slice %42 {offsets = [0, 128], sizes = [16, 32], strides = [1, 1]} : vector<16x256xf32> to vector<16x32xf32>
    %cst_45 = arith.constant dense<0.000000e+00> : vector<16x16xf32>
    %120 = tpu.matmul %117, %118, %cst_45 {dimension_numbers = #tpu.dot_dimension_numbers<[1], [1], [0], [0], [0, 0, 1, 0], [], []>} : vector<16x32xf32>, vector<16x32xf32>, vector<16x16xf32> -> vector<16x16xf32>
    %cst_46 = arith.constant dense<0xFF800000> : vector<16xf32>
    %121 = vector.multi_reduction <maximumf>, %120, %cst_46 [1] : vector<16x16xf32> to vector<16xf32>
    %122 = vector.shape_cast %121 : vector<16xf32> to vector<16x1xf32>
    %123 = vector.broadcast %122 : vector<16x1xf32> to vector<16x16xf32>
    %124 = arith.subf %120, %123 : vector<16x16xf32>
    %125 = math.exp %124 : vector<16x16xf32>
    %cst_47 = arith.constant dense<0.000000e+00> : vector<16xf32>
    %126 = vector.multi_reduction <add>, %125, %cst_47 [1] : vector<16x16xf32> to vector<16xf32>
    %127 = vector.shape_cast %126 : vector<16xf32> to vector<16x1xf32>
    %128 = tpu.reciprocal %127 {approx = true} : vector<16x1xf32> -> vector<16x1xf32>
    %129 = vector.broadcast %128 : vector<16x1xf32> to vector<16x16xf32>
    %130 = arith.mulf %125, %129 : vector<16x16xf32>
    %cst_48 = arith.constant dense<0.000000e+00> : vector<16x32xf32>
    %131 = tpu.matmul %130, %119, %cst_48 {dimension_numbers = #tpu.dot_dimension_numbers<[1], [0], [0], [1], [0, 0, 1, 1], [], []>} : vector<16x16xf32>, vector<16x32xf32>, vector<16x32xf32> -> vector<16x32xf32>
    %132 = vector.extract_strided_slice %43 {offsets = [128, 0], sizes = [32, 128], strides = [1, 1]} : vector<256x128xf32> to vector<32x128xf32>
    %cst_49 = arith.constant dense<0.000000e+00> : vector<16x128xf32>
    %133 = tpu.matmul %131, %132, %cst_49 {dimension_numbers = #tpu.dot_dimension_numbers<[1], [0], [0], [1], [0, 0, 1, 1], [], []>} : vector<16x32xf32>, vector<32x128xf32>, vector<16x128xf32> -> vector<16x128xf32>
    %134 = arith.addf %116, %133 : vector<16x128xf32>
    %135 = vector.extract_strided_slice %40 {offsets = [0, 160], sizes = [16, 32], strides = [1, 1]} : vector<16x256xf32> to vector<16x32xf32>
    %136 = vector.extract_strided_slice %41 {offsets = [0, 160], sizes = [16, 32], strides = [1, 1]} : vector<16x256xf32> to vector<16x32xf32>
    %137 = vector.extract_strided_slice %42 {offsets = [0, 160], sizes = [16, 32], strides = [1, 1]} : vector<16x256xf32> to vector<16x32xf32>
    %cst_50 = arith.constant dense<0.000000e+00> : vector<16x16xf32>
    %138 = tpu.matmul %135, %136, %cst_50 {dimension_numbers = #tpu.dot_dimension_numbers<[1], [1], [0], [0], [0, 0, 1, 0], [], []>} : vector<16x32xf32>, vector<16x32xf32>, vector<16x16xf32> -> vector<16x16xf32>
    %cst_51 = arith.constant dense<0xFF800000> : vector<16xf32>
    %139 = vector.multi_reduction <maximumf>, %138, %cst_51 [1] : vector<16x16xf32> to vector<16xf32>
    %140 = vector.shape_cast %139 : vector<16xf32> to vector<16x1xf32>
    %141 = vector.broadcast %140 : vector<16x1xf32> to vector<16x16xf32>
    %142 = arith.subf %138, %141 : vector<16x16xf32>
    %143 = math.exp %142 : vector<16x16xf32>
    %cst_52 = arith.constant dense<0.000000e+00> : vector<16xf32>
    %144 = vector.multi_reduction <add>, %143, %cst_52 [1] : vector<16x16xf32> to vector<16xf32>
    %145 = vector.shape_cast %144 : vector<16xf32> to vector<16x1xf32>
    %146 = tpu.reciprocal %145 {approx = true} : vector<16x1xf32> -> vector<16x1xf32>
    %147 = vector.broadcast %146 : vector<16x1xf32> to vector<16x16xf32>
    %148 = arith.mulf %143, %147 : vector<16x16xf32>
    %cst_53 = arith.constant dense<0.000000e+00> : vector<16x32xf32>
    %149 = tpu.matmul %148, %137, %cst_53 {dimension_numbers = #tpu.dot_dimension_numbers<[1], [0], [0], [1], [0, 0, 1, 1], [], []>} : vector<16x16xf32>, vector<16x32xf32>, vector<16x32xf32> -> vector<16x32xf32>
    %150 = vector.extract_strided_slice %43 {offsets = [160, 0], sizes = [32, 128], strides = [1, 1]} : vector<256x128xf32> to vector<32x128xf32>
    %cst_54 = arith.constant dense<0.000000e+00> : vector<16x128xf32>
    %151 = tpu.matmul %149, %150, %cst_54 {dimension_numbers = #tpu.dot_dimension_numbers<[1], [0], [0], [1], [0, 0, 1, 1], [], []>} : vector<16x32xf32>, vector<32x128xf32>, vector<16x128xf32> -> vector<16x128xf32>
    %152 = arith.addf %134, %151 : vector<16x128xf32>
    %153 = vector.extract_strided_slice %40 {offsets = [0, 192], sizes = [16, 32], strides = [1, 1]} : vector<16x256xf32> to vector<16x32xf32>
    %154 = vector.extract_strided_slice %41 {offsets = [0, 192], sizes = [16, 32], strides = [1, 1]} : vector<16x256xf32> to vector<16x32xf32>
    %155 = vector.extract_strided_slice %42 {offsets = [0, 192], sizes = [16, 32], strides = [1, 1]} : vector<16x256xf32> to vector<16x32xf32>
    %cst_55 = arith.constant dense<0.000000e+00> : vector<16x16xf32>
    %156 = tpu.matmul %153, %154, %cst_55 {dimension_numbers = #tpu.dot_dimension_numbers<[1], [1], [0], [0], [0, 0, 1, 0], [], []>} : vector<16x32xf32>, vector<16x32xf32>, vector<16x16xf32> -> vector<16x16xf32>
    %cst_56 = arith.constant dense<0xFF800000> : vector<16xf32>
    %157 = vector.multi_reduction <maximumf>, %156, %cst_56 [1] : vector<16x16xf32> to vector<16xf32>
    %158 = vector.shape_cast %157 : vector<16xf32> to vector<16x1xf32>
    %159 = vector.broadcast %158 : vector<16x1xf32> to vector<16x16xf32>
    %160 = arith.subf %156, %159 : vector<16x16xf32>
    %161 = math.exp %160 : vector<16x16xf32>
    %cst_57 = arith.constant dense<0.000000e+00> : vector<16xf32>
    %162 = vector.multi_reduction <add>, %161, %cst_57 [1] : vector<16x16xf32> to vector<16xf32>
    %163 = vector.shape_cast %162 : vector<16xf32> to vector<16x1xf32>
    %164 = tpu.reciprocal %163 {approx = true} : vector<16x1xf32> -> vector<16x1xf32>
    %165 = vector.broadcast %164 : vector<16x1xf32> to vector<16x16xf32>
    %166 = arith.mulf %161, %165 : vector<16x16xf32>
    %cst_58 = arith.constant dense<0.000000e+00> : vector<16x32xf32>
    %167 = tpu.matmul %166, %155, %cst_58 {dimension_numbers = #tpu.dot_dimension_numbers<[1], [0], [0], [1], [0, 0, 1, 1], [], []>} : vector<16x16xf32>, vector<16x32xf32>, vector<16x32xf32> -> vector<16x32xf32>
    %168 = vector.extract_strided_slice %43 {offsets = [192, 0], sizes = [32, 128], strides = [1, 1]} : vector<256x128xf32> to vector<32x128xf32>
    %cst_59 = arith.constant dense<0.000000e+00> : vector<16x128xf32>
    %169 = tpu.matmul %167, %168, %cst_59 {dimension_numbers = #tpu.dot_dimension_numbers<[1], [0], [0], [1], [0, 0, 1, 1], [], []>} : vector<16x32xf32>, vector<32x128xf32>, vector<16x128xf32> -> vector<16x128xf32>
    %170 = arith.addf %152, %169 : vector<16x128xf32>
    %171 = vector.extract_strided_slice %40 {offsets = [0, 224], sizes = [16, 32], strides = [1, 1]} : vector<16x256xf32> to vector<16x32xf32>
    %172 = vector.extract_strided_slice %41 {offsets = [0, 224], sizes = [16, 32], strides = [1, 1]} : vector<16x256xf32> to vector<16x32xf32>
    %173 = vector.extract_strided_slice %42 {offsets = [0, 224], sizes = [16, 32], strides = [1, 1]} : vector<16x256xf32> to vector<16x32xf32>
    %cst_60 = arith.constant dense<0.000000e+00> : vector<16x16xf32>
    %174 = tpu.matmul %171, %172, %cst_60 {dimension_numbers = #tpu.dot_dimension_numbers<[1], [1], [0], [0], [0, 0, 1, 0], [], []>} : vector<16x32xf32>, vector<16x32xf32>, vector<16x16xf32> -> vector<16x16xf32>
    %cst_61 = arith.constant dense<0xFF800000> : vector<16xf32>
    %175 = vector.multi_reduction <maximumf>, %174, %cst_61 [1] : vector<16x16xf32> to vector<16xf32>
    %176 = vector.shape_cast %175 : vector<16xf32> to vector<16x1xf32>
    %177 = vector.broadcast %176 : vector<16x1xf32> to vector<16x16xf32>
    %178 = arith.subf %174, %177 : vector<16x16xf32>
    %179 = math.exp %178 : vector<16x16xf32>
    %cst_62 = arith.constant dense<0.000000e+00> : vector<16xf32>
    %180 = vector.multi_reduction <add>, %179, %cst_62 [1] : vector<16x16xf32> to vector<16xf32>
    %181 = vector.shape_cast %180 : vector<16xf32> to vector<16x1xf32>
    %182 = tpu.reciprocal %181 {approx = true} : vector<16x1xf32> -> vector<16x1xf32>
    %183 = vector.broadcast %182 : vector<16x1xf32> to vector<16x16xf32>
    %184 = arith.mulf %179, %183 : vector<16x16xf32>
    %cst_63 = arith.constant dense<0.000000e+00> : vector<16x32xf32>
    %185 = tpu.matmul %184, %173, %cst_63 {dimension_numbers = #tpu.dot_dimension_numbers<[1], [0], [0], [1], [0, 0, 1, 1], [], []>} : vector<16x16xf32>, vector<16x32xf32>, vector<16x32xf32> -> vector<16x32xf32>
    %186 = vector.extract_strided_slice %43 {offsets = [224, 0], sizes = [32, 128], strides = [1, 1]} : vector<256x128xf32> to vector<32x128xf32>
    %cst_64 = arith.constant dense<0.000000e+00> : vector<16x128xf32>
    %187 = tpu.matmul %185, %186, %cst_64 {dimension_numbers = #tpu.dot_dimension_numbers<[1], [0], [0], [1], [0, 0, 1, 1], [], []>} : vector<16x32xf32>, vector<32x128xf32>, vector<16x128xf32> -> vector<16x128xf32>
    %188 = arith.addf %170, %187 : vector<16x128xf32>
    %c0_65 = arith.constant 0 : index
    %c0_66 = arith.constant 0 : index
    %189 = vector.load %arg9[%c0_65, %c0_66] : memref<1x128xf32, #tpu.memory_space<vmem>>, vector<1x128xf32>
    %190 = vector.broadcast %189 : vector<1x128xf32> to vector<16x128xf32>
    %191 = arith.addf %188, %190 : vector<16x128xf32>
    %c0_67 = arith.constant 0 : index
    %c0_68 = arith.constant 0 : index
    %192 = vector.load %arg10[%c0_67, %c0_68] : memref<1x128xf32, #tpu.memory_space<vmem>>, vector<1x128xf32>
    %c0_69 = arith.constant 0 : index
    %c0_70 = arith.constant 0 : index
    %193 = vector.load %arg11[%c0_69, %c0_70] : memref<1x128xf32, #tpu.memory_space<vmem>>, vector<1x128xf32>
    %194 = arith.addf %34, %191 : vector<16x128xf32>
    %cst_71 = arith.constant dense<0.000000e+00> : vector<16xf32>
    %195 = vector.multi_reduction <add>, %194, %cst_71 [1] : vector<16x128xf32> to vector<16xf32>
    %196 = vector.shape_cast %195 : vector<16xf32> to vector<16x1xf32>
    %cst_72 = arith.constant 1.280000e+02 : f32
    %197 = vector.broadcast %cst_72 : f32 to vector<16x1xf32>
    %198 = arith.divf %196, %197 : vector<16x1xf32>
    %199 = vector.broadcast %198 : vector<16x1xf32> to vector<16x128xf32>
    %200 = arith.subf %194, %199 : vector<16x128xf32>
    %201 = arith.mulf %200, %200 : vector<16x128xf32>
    %cst_73 = arith.constant dense<0.000000e+00> : vector<16xf32>
    %202 = vector.multi_reduction <add>, %201, %cst_73 [1] : vector<16x128xf32> to vector<16xf32>
    %203 = vector.shape_cast %202 : vector<16xf32> to vector<16x1xf32>
    %cst_74 = arith.constant 1.280000e+02 : f32
    %204 = vector.broadcast %cst_74 : f32 to vector<16x1xf32>
    %205 = arith.divf %203, %204 : vector<16x1xf32>
    %206 = vector.broadcast %198 : vector<16x1xf32> to vector<16x128xf32>
    %207 = arith.subf %194, %206 : vector<16x128xf32>
    %cst_75 = arith.constant 9.99999974E-6 : f32
    %208 = vector.broadcast %cst_75 : f32 to vector<16x1xf32>
    %209 = arith.addf %205, %208 : vector<16x1xf32>
    %210 = math.rsqrt %209 : vector<16x1xf32>
    %211 = vector.broadcast %210 : vector<16x1xf32> to vector<16x128xf32>
    %212 = arith.mulf %207, %211 : vector<16x128xf32>
    %213 = vector.broadcast %192 : vector<1x128xf32> to vector<16x128xf32>
    %214 = arith.mulf %212, %213 : vector<16x128xf32>
    %215 = vector.broadcast %193 : vector<1x128xf32> to vector<16x128xf32>
    %216 = arith.addf %214, %215 : vector<16x128xf32>
    %c0_76 = arith.constant 0 : index
    %c0_77 = arith.constant 0 : index
    %217 = vector.load %arg12[%c0_76, %c0_77] : memref<128x128xf32, #tpu.memory_space<vmem>>, vector<128x128xf32>
    %cst_78 = arith.constant dense<0.000000e+00> : vector<16x128xf32>
    %218 = tpu.matmul %216, %217, %cst_78 {dimension_numbers = #tpu.dot_dimension_numbers<[1], [0], [0], [1], [0, 0, 1, 1], [], []>} : vector<16x128xf32>, vector<128x128xf32>, vector<16x128xf32> -> vector<16x128xf32>
    %c0_79 = arith.constant 0 : index
    %c0_80 = arith.constant 0 : index
    %219 = vector.load %arg13[%c0_79, %c0_80] : memref<1x128xf32, #tpu.memory_space<vmem>>, vector<1x128xf32>
    %220 = vector.broadcast %219 : vector<1x128xf32> to vector<16x128xf32>
    %221 = arith.addf %218, %220 : vector<16x128xf32>
    %222 = arith.addf %216, %221 : vector<16x128xf32>
    %cst_81 = arith.constant dense<0.000000e+00> : vector<16xf32>
    %223 = vector.multi_reduction <add>, %222, %cst_81 [1] : vector<16x128xf32> to vector<16xf32>
    %224 = vector.shape_cast %223 : vector<16xf32> to vector<16x1xf32>
    %cst_82 = arith.constant 1.280000e+02 : f32
    %225 = vector.broadcast %cst_82 : f32 to vector<16x1xf32>
    %226 = arith.divf %224, %225 : vector<16x1xf32>
    %227 = vector.broadcast %226 : vector<16x1xf32> to vector<16x128xf32>
    %228 = arith.subf %222, %227 : vector<16x128xf32>
    %229 = arith.mulf %228, %228 : vector<16x128xf32>
    %cst_83 = arith.constant dense<0.000000e+00> : vector<16xf32>
    %230 = vector.multi_reduction <add>, %229, %cst_83 [1] : vector<16x128xf32> to vector<16xf32>
    %231 = vector.shape_cast %230 : vector<16xf32> to vector<16x1xf32>
    %cst_84 = arith.constant 1.280000e+02 : f32
    %232 = vector.broadcast %cst_84 : f32 to vector<16x1xf32>
    %233 = arith.divf %231, %232 : vector<16x1xf32>
    %234 = vector.broadcast %226 : vector<16x1xf32> to vector<16x128xf32>
    %235 = arith.subf %222, %234 : vector<16x128xf32>
    %cst_85 = arith.constant 9.99999974E-6 : f32
    %236 = vector.broadcast %cst_85 : f32 to vector<16x1xf32>
    %237 = arith.addf %233, %236 : vector<16x1xf32>
    %238 = math.rsqrt %237 : vector<16x1xf32>
    %239 = vector.broadcast %238 : vector<16x1xf32> to vector<16x128xf32>
    %240 = arith.mulf %235, %239 : vector<16x128xf32>
    %241 = vector.broadcast %192 : vector<1x128xf32> to vector<16x128xf32>
    %242 = arith.mulf %240, %241 : vector<16x128xf32>
    %243 = vector.broadcast %193 : vector<1x128xf32> to vector<16x128xf32>
    %244 = arith.addf %242, %243 : vector<16x128xf32>
    %245 = arith.cmpf one, %244, %244 : vector<16x128xf32>
    %cst_86 = arith.constant 0.000000e+00 : f32
    %246 = vector.broadcast %cst_86 : f32 to vector<16x128xf32>
    %247 = arith.select %245, %246, %244 : vector<16x128xi1>, vector<16x128xf32>
    %c0_87 = arith.constant 0 : index
    %c0_88 = arith.constant 0 : index
    %248 = vector.load %arg14[%c0_87, %c0_88] : memref<5x16xf32, #tpu.memory_space<vmem>>, vector<5x16xf32>
    %cst_89 = arith.constant dense<0.000000e+00> : vector<5x128xf32>
    %249 = tpu.matmul %248, %247, %cst_89 {dimension_numbers = #tpu.dot_dimension_numbers<[1], [0], [0], [1], [0, 0, 1, 1], [], []>} : vector<5x16xf32>, vector<16x128xf32>, vector<5x128xf32> -> vector<5x128xf32>
    %c0_90 = arith.constant 0 : index
    %c0_91 = arith.constant 0 : index
    %250 = vector.load %arg19[%c0_90, %c0_91] : memref<5x128xf32, #tpu.memory_space<vmem>>, vector<5x128xf32>
    tpu.vector_store %arg19[%c0_90, %c0_91], %249 {strides = array<i32>} : memref<5x128xf32, #tpu.memory_space<vmem>>, vector<5x128xf32>,
    %c0_92 = arith.constant 0 : index
    %c0_93 = arith.constant 0 : index
    %251 = vector.load %arg15[%c0_92, %c0_93] : memref<128x128xf32, #tpu.memory_space<vmem>>, vector<128x128xf32>
    %cst_94 = arith.constant dense<0.000000e+00> : vector<5x128xf32>
    %252 = tpu.matmul %249, %251, %cst_94 {dimension_numbers = #tpu.dot_dimension_numbers<[1], [0], [0], [1], [0, 0, 1, 1], [], []>} : vector<5x128xf32>, vector<128x128xf32>, vector<5x128xf32> -> vector<5x128xf32>
    %c0_95 = arith.constant 0 : index
    %c0_96 = arith.constant 0 : index
    %253 = vector.load %arg16[%c0_95, %c0_96] : memref<1x128xf32, #tpu.memory_space<vmem>>, vector<1x128xf32>
    %254 = vector.broadcast %253 : vector<1x128xf32> to vector<5x128xf32>
    %255 = arith.addf %252, %254 : vector<5x128xf32>
    %cst_97 = arith.constant 0.000000e+00 : f32
    %256 = vector.broadcast %cst_97 : f32 to vector<5x128xf32>
    %257 = arith.maximumf %255, %256 : vector<5x128xf32>
    %c0_98 = arith.constant 0 : index
    %c0_99 = arith.constant 0 : index
    %258 = vector.load %arg17[%c0_98, %c0_99] : memref<128x6xf32, #tpu.memory_space<vmem>>, vector<128x6xf32>
    %cst_100 = arith.constant dense<0.000000e+00> : vector<5x6xf32>
    %259 = tpu.matmul %257, %258, %cst_100 {dimension_numbers = #tpu.dot_dimension_numbers<[1], [0], [0], [1], [0, 0, 1, 1], [], []>} : vector<5x128xf32>, vector<128x6xf32>, vector<5x6xf32> -> vector<5x6xf32>
    %c0_101 = arith.constant 0 : index
    %c0_102 = arith.constant 0 : index
    %260 = vector.load %arg18[%c0_101, %c0_102] : memref<1x6xf32, #tpu.memory_space<vmem>>, vector<1x6xf32>
    %261 = vector.broadcast %260 : vector<1x6xf32> to vector<5x6xf32>
    %262 = arith.addf %259, %261 : vector<5x6xf32>
    %263 = arith.cmpf one, %262, %262 : vector<5x6xf32>
    %cst_103 = arith.constant 0.000000e+00 : f32
    %264 = vector.broadcast %cst_103 : f32 to vector<5x6xf32>
    %265 = arith.select %263, %264, %262 : vector<5x6xi1>, vector<5x6xf32>
    %c0_104 = arith.constant 0 : index
    %c0_105 = arith.constant 0 : index
    %266 = vector.load %arg20[%c0_104, %c0_105] : memref<5x6xf32, #tpu.memory_space<vmem>>, vector<5x6xf32>
    tpu.vector_store %arg20[%c0_104, %c0_105], %265 {strides = array<i32>} : memref<5x6xf32, #tpu.memory_space<vmem>>, vector<5x6xf32>,
    return
  }
}

</mosaic_0001>

<bundles_post_ra>
// kernel: _forward_jit.1
= control target key start
LH: loop header
LB: loop body
LE: loop exit
PB: predicated region body
PF: predicated region fallthrough
CT: control target
= control target key end

     0   :  { %s5225_s0 = inlined_call_operand.hbm [shape: f32[16,32], index: 0, kind: input, shape index: {}]   ;;  %s5226_s1 = inlined_call_operand.vmem [shape: f32[1,32], index: 1, kind: input, shape index: {}]   ;;  %s5227_s2 = inlined_call_operand.hbm [shape: f32[1,32], index: 2, kind: input, shape index: {}]   ;;  %s5228_s3 = inlined_call_operand.vmem [shape: f32[32,128], index: 3, kind: input, shape index: {}]   ;;  %s5229_s4 = inlined_call_operand.hbm [shape: f32[1,128], index: 4, kind: input, shape index: {}]   ;;  %s5230_s5 = inlined_call_operand.hbm [shape: f32[16,128], index: 5, kind: input, shape index: {}]   ;;  %s5231_s6 = inlined_call_operand.hbm [shape: f32[128,768], index: 6, kind: input, shape index: {}]   ;;  %s5232_s7 = inlined_call_operand.hbm [shape: f32[1,768], index: 7, kind: input, shape index: {}]   ;;  %s5233_s8 = inlined_call_operand.hbm [shape: f32[256,128], index: 8, kind: input, shape index: {}]   ;;  %s5234_s9 = inlined_call_operand.hbm [shape: f32[1,128], index: 9, kind: input, shape index: {}]   ;;  %s5235_s10 = inlined_call_operand.hbm [shape: f32[1,128], index: 10, kind: input, shape index: {}]   ;;  %s5236_s11 = inlined_call_operand.hbm [shape: f32[1,128], index: 11, kind: input, shape index: {}]   ;;  %s5237_s12 = inlined_call_operand.vmem [shape: f32[128,128], index: 12, kind: input, shape index: {}]   ;;  %s5238_s13 = inlined_call_operand.hbm [shape: f32[1,128], index: 13, kind: input, shape index: {}]   ;;  %s5239_s14 = inlined_call_operand.hbm [shape: f32[5,16], index: 14, kind: input, shape index: {}]   ;;  %s5240_s15 = inlined_call_operand.hbm [shape: f32[128,128], index: 15, kind: input, shape index: {}]   ;;  %s5241_s16 = inlined_call_operand.hbm [shape: f32[1,128], index: 16, kind: input, shape index: {}]   ;;  %s5242_s17 = inlined_call_operand.vmem [shape: f32[128,6], index: 17, kind: input, shape index: {}]   ;;  %s5243_s18 = inlined_call_operand.hbm [shape: f32[1,6], index: 18, kind: input, shape index: {}]   ;;  %s5244_s19 = inlined_call_operand.hbm [shape: f32[5,128], index: 19, kind: output, shape index: {0}]   ;;  %s5245_s20 = inlined_call_operand.hbm [shape: f32[5,6], index: 20, kind: output, shape index: {1}]  }
   0x1   :  { %5247 = sst [smem:[#allocation39_spill]] %s5225_s0 }
   0x2   :  { %5248 = sst [smem:[#allocation40_spill]] %s5226_s1 }
   0x3   :  { %5249 = sst [smem:[#allocation41_spill]] %s5227_s2 }
   0x4   :  { %5250 = sst [smem:[#allocation42_spill]] %s5228_s3 }
   0x5   :  { %5251 = sst [smem:[#allocation43_spill]] %s5229_s4 }
   0x6   :  { %26 = vsyncpa [#allocation3], 0 }
   0x7   :  { %27 = vsyncpa [#allocation6], 0 }
   0x8   :  { %28 = vsyncpa [#allocation9], 0 }
   0x9   :  { %29 = vsyncpa [#allocation12], 0 }
   0xa   :  { %30 = vsyncpa [#allocation15], 0 }
   0xb   :  { %31 = vsyncpa [#allocation18], 0 }
   0xc   :  { %32 = vsyncpa [#allocation21], 0 }
   0xd   :  { %33 = vsyncpa [#allocation24], 0 }
   0xe   :  { %34 = vsyncpa [#allocation4], 0 }
   0xf   :  { %35 = vsyncpa [#allocation28], 0  ;;  %s4555_s1 = smov [#allocation5]  }
  0x10   :  { %s56_s22 = sshll.u32 %s4555_s1, 4  ;;  %s57_s22 = int_to_ptr.vmem [resolvable:$true] %s56_s22 }
  0x11   :  { %s4203_s23 = scalar_lea.vmem %s57_s22, 16  ;;  %s4207_s24 = scalar_lea.vmem %s57_s22, 32 }
  0x12   :  { %p4204_p0 = scmp.ne.s32.totalorder %s57_s22, %s4203_s23  ;;  %p4208_p1 = scmp.lt.s32.totalorder %s57_s22, %s57_s22 }
  0x13   :  { %p4209_p2 = scmp.lt.s32.totalorder %s4207_s24, %s4203_s23 }
  0x15   :  { %p4210_p3 = por %p4209_p2, %p4208_p1 }
  0x17   :  { %p4211_p4 = pnand %p4210_p3, %p4204_p0 }
  0x19   :  { %4214 = shalt.err (!%p4211_p4)
}
  0x1a   :  { %s5252_s3 = sld [smem:[#allocation41_spill]]  ;;  %s4556_s26 = smov [#allocation8]  }
  0x1b   :  { %s77_s27 = sshll.u32 %s4556_s26, 4  ;;  %s4557_s28 = smov [#allocation11]   ;;  %s78_s27 = int_to_ptr.vmem [resolvable:$true] %s77_s27 }
  0x1c   :  { %s102_s4 = sshll.u32 %s4557_s28, 4  ;;  %s4223_s29 = scalar_lea.vmem %s78_s27, 256  ;;  %s103_s4 = int_to_ptr.vmem [resolvable:$true] %s102_s4 }
  0x1d   :  { %p4224_p5 = scmp.ne.s32.totalorder %s78_s27, %s4223_s29  ;;  %p4228_p6 = scmp.lt.s32.totalorder %s78_s27, %s78_s27 }
  0x1e   :  { %p4229_p7 = scmp.lt.s32.totalorder %s4223_s29, %s4223_s29 }
  0x20   :  { %59 = dma.hbm_to_vmem [thread:$0]  %s5252_s3, 16, %s57_s22, [#allocation6]  }
  0x21   :  { %p4230_p8 = por %p4229_p7, %p4228_p6 }
  0x23   :  { %p4231_p9 = pnand %p4230_p8, %p4224_p5 }
  0x25   :  { %4234 = shalt.err (!%p4231_p9)
}
  0x26   :  { %s4558_s30 = smov 128   ;;  %s4559_s0 = smov 8  }
  0x27   :  { %83 = dma.hbm_to_vmem [thread:$0]  %s5230_s5, 256, %s78_s27, [#allocation9], %s4558_s30, %s4558_s30, %s4559_s0  }
  0x28   :  { %s4243_s22 = scalar_lea.vmem %s103_s4, 96  ;;  %p4248_p11 = scmp.lt.s32.totalorder %s103_s4, %s103_s4 }
  0x29   :  { %p4244_p10 = scmp.ne.s32.totalorder %s103_s4, %s4243_s22  ;;  %p4249_p12 = scmp.lt.s32.totalorder %s4243_s22, %s4243_s22 }
  0x2b   :  { %p4250_p13 = por %p4249_p12, %p4248_p11 }
  0x2d   :  { %p4251_p0 = pnand %p4250_p13, %p4244_p10 }
  0x2f   :  { %4254 = shalt.err (!%p4251_p0)
}
  0x30   :  { %105 = dma.hbm_to_vmem [thread:$0]  %s5232_s7, 96, %s103_s4, [#allocation12]  }
  0x31   :  { %s4560_s2 = smov [#allocation14]   ;;  %s4561_s3 = smov [#allocation17]  }
  0x32   :  { %s124_s25 = sshll.u32 %s4560_s2, 4  ;;  %s144_s26 = sshll.u32 %s4561_s3, 4  ;;  %s125_s25 = int_to_ptr.vmem [resolvable:$true] %s124_s25  ;;  %s145_s26 = int_to_ptr.vmem [resolvable:$true] %s144_s26 }
  0x33   :  { %s4263_s28 = scalar_lea.vmem %s125_s25, 16  ;;  %s4267_s5 = scalar_lea.vmem %s125_s25, 32 }
  0x34   :  { %p4264_p1 = scmp.ne.s32.totalorder %s125_s25, %s4263_s28  ;;  %p4268_p2 = scmp.lt.s32.totalorder %s125_s25, %s125_s25 }
  0x35   :  { %p4269_p3 = scmp.lt.s32.totalorder %s4267_s5, %s4263_s28 }
  0x37   :  { %p4270_p4 = por %p4269_p3, %p4268_p2 }
  0x39   :  { %p4271_p5 = pnand %p4270_p4, %p4264_p1 }
  0x3b   :  { %4274 = shalt.err (!%p4271_p5)
}
  0x3c   :  { %127 = dma.hbm_to_vmem [thread:$0]  %s5234_s9, 16, %s125_s25, [#allocation15]  }
  0x3d   :  { %s4283_s21 = scalar_lea.vmem %s145_s26, 16  ;;  %s4287_s7 = scalar_lea.vmem %s145_s26, 32 }
  0x3e   :  { %p4284_p6 = scmp.ne.s32.totalorder %s145_s26, %s4283_s21  ;;  %p4288_p7 = scmp.lt.s32.totalorder %s145_s26, %s145_s26 }
  0x3f   :  { %p4289_p8 = scmp.lt.s32.totalorder %s4287_s7, %s4283_s21 }
  0x41   :  { %p4290_p9 = por %p4289_p8, %p4288_p7 }
  0x43   :  { %p4291_p10 = pnand %p4290_p9, %p4284_p6 }
  0x45   :  { %4294 = shalt.err (!%p4291_p10)
}
  0x46   :  { %147 = dma.hbm_to_vmem [thread:$0]  %s5236_s11, 16, %s145_s26, [#allocation18]  }
  0x47   :  { %s4562_s22 = smov [#allocation20]   ;;  %s4563_s24 = smov [#allocation23]  }
  0x48   :  { %s166_s23 = sshll.u32 %s4562_s22, 4  ;;  %s188_s2 = sshll.u32 %s4563_s24, 4  ;;  %s167_s23 = int_to_ptr.vmem [resolvable:$true] %s166_s23  ;;  %s189_s2 = int_to_ptr.vmem [resolvable:$true] %s188_s2 }
  0x49   :  { %s4303_s3 = scalar_lea.vmem %s167_s23, 128  ;;  %p4308_p12 = scmp.lt.s32.totalorder %s167_s23, %s167_s23 }
  0x4a   :  { %p4304_p11 = scmp.ne.s32.totalorder %s167_s23, %s4303_s3  ;;  %p4309_p13 = scmp.lt.s32.totalorder %s4303_s3, %s4303_s3 }
  0x4c   :  { %p4310_p0 = por %p4309_p13, %p4308_p12 }
  0x4e   :  { %p4311_p1 = pnand %p4310_p0, %p4304_p11 }
  0x50   :  { %4314 = shalt.err (!%p4311_p1)
}
  0x51   :  { %169 = dma.hbm_to_vmem [thread:$0]  %s5239_s14, 128, %s167_s23, [#allocation21]  }
  0x52   :  { %s4323_s28 = scalar_lea.vmem %s189_s2, 16  ;;  %s4327_s11 = scalar_lea.vmem %s189_s2, 32 }
  0x53   :  { %p4324_p2 = scmp.ne.s32.totalorder %s189_s2, %s4323_s28  ;;  %p4328_p3 = scmp.lt.s32.totalorder %s189_s2, %s189_s2 }
  0x54   :  { %p4329_p4 = scmp.lt.s32.totalorder %s4327_s11, %s4323_s28 }
  0x56   :  { %p4330_p5 = por %p4329_p4, %p4328_p3 }
  0x58   :  { %p4331_p6 = pnand %p4330_p5, %p4324_p2 }
  0x5a   :  { %4334 = shalt.err (!%p4331_p6)
}
  0x5b   :  { %191 = dma.hbm_to_vmem [thread:$0]  %s5241_s16, 16, %s189_s2, [#allocation24]  }
  0x5c   :  { %s4564_s27 = smov [#allocation2]   ;;  %s4565_s21 = smov [#allocation7]  }
  0x5d   :  { %s41_s29 = sshll.u32 %s4564_s27, 4  ;;  %s68_s7 = sshll.u32 %s4565_s21, 4  ;;  %s42_s29 = int_to_ptr.vmem [resolvable:$true] %s41_s29  ;;  %s69_s7 = int_to_ptr.vmem [resolvable:$true] %s68_s7 }
  0x5e   :  { %s4343_s4 = scalar_lea.vmem %s42_s29, 256  ;;  %p4348_p8 = scmp.lt.s32.totalorder %s42_s29, %s42_s29 }
  0x5f   :  { %p4344_p7 = scmp.ne.s32.totalorder %s42_s29, %s4343_s4  ;;  %p4349_p9 = scmp.lt.s32.totalorder %s4343_s4, %s4343_s4 }
  0x61   :  { %p4350_p10 = por %p4349_p9, %p4348_p8 }
  0x63   :  { %p4351_p11 = pnand %p4350_p10, %p4344_p7 }
  0x65   :  { %4354 = shalt.err (!%p4351_p11)
}
  0x66   :  { %s5253_s22 = sld [smem:[#allocation39_spill]]  ;;  %s4363_s16 = scalar_lea.vmem %s69_s7, 16 }
  0x67   :  { %p4364_p12 = scmp.ne.s32.totalorder %s69_s7, %s4363_s16  ;;  %s4367_s23 = scalar_lea.vmem %s69_s7, 32 }
  0x68   :  { %p4368_p13 = scmp.lt.s32.totalorder %s69_s7, %s69_s7  ;;  %p4369_p0 = scmp.lt.s32.totalorder %s4367_s23, %s4363_s16 }
  0x6a   :  { %p4370_p1 = por %p4369_p0, %p4368_p13 }
  0x6c   :  { %47 = dma.hbm_to_vmem [thread:$0]  %s5253_s22, 256, %s42_s29, [#allocation3], %s4558_s30, %s4558_s30, %s4559_s0  }
  0x6d   :  { %p4371_p2 = pnand %p4370_p1, %p4364_p12 }
  0x6f   :  { %4374 = shalt.err (!%p4371_p2)
}
  0x70   :  { %s5254_s3 = sld [smem:[#allocation43_spill]]  ;;  %s4566_s9 = smov [#allocation10]  }
  0x71   :  { %s89_s25 = sshll.u32 %s4566_s9, 4  ;;  %s90_s25 = int_to_ptr.vmem [resolvable:$true] %s89_s25 }
  0x72   :  { %s4383_s28 = scalar_lea.vmem %s90_s25, 12288  ;;  %p4388_p4 = scmp.lt.s32.totalorder %s90_s25, %s90_s25 }
  0x73   :  { %p4384_p3 = scmp.ne.s32.totalorder %s90_s25, %s4383_s28  ;;  %p4389_p5 = scmp.lt.s32.totalorder %s4383_s28, %s4383_s28 }
  0x75   :  { %p4390_p6 = por %p4389_p5, %p4388_p4 }
  0x76   :  { %71 = dma.hbm_to_vmem [thread:$0]  %s5254_s3, 16, %s69_s7, [#allocation6]  }
  0x77   :  { %p4391_p7 = pnand %p4390_p6, %p4384_p3 }
  0x79   :  { %4394 = shalt.err (!%p4391_p7)
}
  0x7a   :  { %s4567_s11 = smov 768   ;;  %s4568_s26 = smov 48  }
  0x7b   :  { %95 = dma.hbm_to_vmem [thread:$0]  %s5231_s6, 12288, %s90_s25, [#allocation9], %s4567_s11, %s4567_s11, %s4568_s26  }
  0x7c   :  { %s4569_s29 = smov [#allocation13]   ;;  %s4570_s4 = smov [#allocation16]  }
  0x7d   :  { %s111_s21 = sshll.u32 %s4569_s29, 4  ;;  %s134_s7 = sshll.u32 %s4570_s4, 4  ;;  %s112_s21 = int_to_ptr.vmem [resolvable:$true] %s111_s21  ;;  %s135_s7 = int_to_ptr.vmem [resolvable:$true] %s134_s7 }
  0x7e   :  { %s4403_s14 = scalar_lea.vmem %s112_s21, 4096  ;;  %p4408_p9 = scmp.lt.s32.totalorder %s112_s21, %s112_s21 }
  0x7f   :  { %p4404_p8 = scmp.ne.s32.totalorder %s112_s21, %s4403_s14  ;;  %p4409_p10 = scmp.lt.s32.totalorder %s4403_s14, %s4403_s14 }
  0x81   :  { %p4410_p11 = por %p4409_p10, %p4408_p9 }
  0x83   :  { %p4411_p12 = pnand %p4410_p11, %p4404_p8 }
  0x85   :  { %4414 = shalt.err (!%p4411_p12)
}
  0x86   :  { %117 = dma.hbm_to_vmem [thread:$0]  %s5233_s8, 4096, %s112_s21, [#allocation12], %s4558_s30, %s4558_s30, %s4559_s0  }
  0x87   :  { %s4423_s6 = scalar_lea.vmem %s135_s7, 16  ;;  %s4427_s16 = scalar_lea.vmem %s135_s7, 32 }
  0x88   :  { %p4424_p13 = scmp.ne.s32.totalorder %s135_s7, %s4423_s6  ;;  %p4428_p0 = scmp.lt.s32.totalorder %s135_s7, %s135_s7 }
  0x89   :  { %p4429_p1 = scmp.lt.s32.totalorder %s4427_s16, %s4423_s6 }
  0x8b   :  { %p4430_p2 = por %p4429_p1, %p4428_p0 }
  0x8d   :  { %p4431_p3 = pnand %p4430_p2, %p4424_p13 }
  0x8f   :  { %4434 = shalt.err (!%p4431_p3)
}
  0x90   :  { %137 = dma.hbm_to_vmem [thread:$0]  %s5235_s10, 16, %s135_s7, [#allocation15]  }
  0x91   :  { %s4571_s2 = smov [#allocation19]   ;;  %s4572_s9 = smov [#allocation22]  }
  0x92   :  { %s156_s3 = sshll.u32 %s4571_s2, 4  ;;  %s175_s25 = sshll.u32 %s4572_s9, 4  ;;  %s157_s3 = int_to_ptr.vmem [resolvable:$true] %s156_s3  ;;  %s176_s25 = int_to_ptr.vmem [resolvable:$true] %s175_s25 }
  0x93   :  { %s4443_s28 = scalar_lea.vmem %s157_s3, 16  ;;  %s4447_s8 = scalar_lea.vmem %s157_s3, 32 }
  0x94   :  { %p4444_p4 = scmp.ne.s32.totalorder %s157_s3, %s4443_s28  ;;  %p4448_p5 = scmp.lt.s32.totalorder %s157_s3, %s157_s3 }
  0x95   :  { %p4449_p6 = scmp.lt.s32.totalorder %s4447_s8, %s4443_s28 }
  0x97   :  { %p4450_p7 = por %p4449_p6, %p4448_p5 }
  0x99   :  { %p4451_p8 = pnand %p4450_p7, %p4444_p4 }
  0x9b   :  { %4454 = shalt.err (!%p4451_p8)
}
  0x9c   :  { %159 = dma.hbm_to_vmem [thread:$0]  %s5238_s13, 16, %s157_s3, [#allocation18]  }
  0x9d   :  { %s4463_s5 = scalar_lea.vmem %s176_s25, 2048  ;;  %p4468_p10 = scmp.lt.s32.totalorder %s176_s25, %s176_s25 }
  0x9e   :  { %p4464_p9 = scmp.ne.s32.totalorder %s176_s25, %s4463_s5  ;;  %p4469_p11 = scmp.lt.s32.totalorder %s4463_s5, %s4463_s5 }
  0xa0   :  { %p4470_p12 = por %p4469_p11, %p4468_p10 }
  0xa2   :  { %p4471_p13 = pnand %p4470_p12, %p4464_p9 }
  0xa4   :  { %4474 = shalt.err (!%p4471_p13)
}
  0xa5   :  { %181 = dma.hbm_to_vmem [thread:$0]  %s5240_s15, 2048, %s176_s25, [#allocation21], %s4558_s30, %s4558_s30, %s4559_s0  }
  0xa6   :  { %s4573_s29 = smov [#allocation25]  }
  0xa7   :  { %s200_s21 = sshll.u32 %s4573_s29, 4  ;;  %s201_s21 = int_to_ptr.vmem [resolvable:$true] %s200_s21 }
  0xa8   :  { %s4483_s4 = scalar_lea.vmem %s201_s21, 16  ;;  %s4487_s13 = scalar_lea.vmem %s201_s21, 32 }
  0xa9   :  { %p4484_p0 = scmp.ne.s32.totalorder %s201_s21, %s4483_s4  ;;  %p4488_p1 = scmp.lt.s32.totalorder %s201_s21, %s201_s21 }
  0xaa   :  { %p4489_p2 = scmp.lt.s32.totalorder %s4487_s13, %s4483_s4 }
  0xac   :  { %p4490_p3 = por %p4489_p2, %p4488_p1 }
  0xae   :  { %p4491_p4 = pnand %p4490_p3, %p4484_p0 }
  0xb0   :  { %4494 = shalt.err (!%p4491_p4)
}
  0xb1   :  { %203 = dma.hbm_to_vmem [thread:$0]  %s5243_s18, 16, %s201_s21, [#allocation24]  }
  0xb2   :  { %4535 = dma.done.wait [#allocation3], 256  }
  0xb3   :  { %4536 = vsyncadd [#allocation3], 4294967040 }
  0xb4   :  { %4537 = dma.done.wait [#allocation6], 32  }
  0xb5   :  { %4538 = vsyncadd [#allocation6], 4294967264 }
  0xb6   :  { %4539 = dma.done.wait [#allocation9], 12544  }
  0xb7   :  { %4540 = vsyncadd [#allocation9], 4294954752 }
  0xb8   :  { %4541 = dma.done.wait [#allocation12], 4192  }
  0xb9   :  { %4542 = vsyncadd [#allocation12], 4294963104 }
  0xba   :  { %4543 = dma.done.wait [#allocation15], 32  }
  0xbb   :  { %4544 = vsyncadd [#allocation15], 4294967264 }
  0xbc   :  { %4545 = dma.done.wait [#allocation18], 32  }
  0xbd   :  { %4546 = vsyncadd [#allocation18], 4294967264 }
  0xbe   :  { %4547 = dma.done.wait [#allocation21], 2176  }
  0xbf   :  { %4548 = vsyncadd [#allocation21], 4294965120 }
  0xc0   :  { %4549 = dma.done.wait [#allocation24], 32  }
  0xc1   :  { %4550 = vsyncadd [#allocation24], 4294967264  ;;  %vm253_vm0 = vcmask 261120   ;;  %v249_v0 = vld [vmem:[#allocation2] sm:$0xff]  ;;  %v250_v1 = vld [vmem:[#allocation2 + $0x8] sm:$0xff]  ;;  %s5255_s30 = sld [smem:[#allocation42_spill]] }
  0xc2   :  { %v254_v2 = vsel %vm253_vm0, %v249_v0, 0.0  ;;  %v257_v3 = vsel %vm253_vm0, %v250_v1, 0.0  ;;  %v488_v18 = vld [vmem:[#allocation10 + $0x2d8] sm:$0xff]  ;;  %v487_v19 = vld [vmem:[#allocation10 + $0x2d0] sm:$0xff]  ;;  %v490_v20 = vld [vmem:[#allocation10 + $0x2e8] sm:$0xff]  ;;  %s5256_s3 = sld [smem:[#allocation40_spill]] }
  0xc3   :  { %255 = vadd.xlane.f32.xlu0 %v254_v2  ;;  %525 = vmatprep.subr.mxu1 %v488_v18  ;;  %v482_v21 = vld [vmem:[#allocation10 + $0x2a8] sm:$0xff]  ;;  %v481_v22 = vld [vmem:[#allocation10 + $0x2a0] sm:$0xff]  ;;  %v476_v23 = vld [vmem:[#allocation10 + $0x278] sm:$0xff]  ;;  %vm875_vm3 = vcmask 130048   ;;  %s4575_s9 = smov 96   ;;  %s4576_s25 = smov 64  }
  0xc4   :  { %526 = vmatpush1.msra.mxu1 %v487_v19  ;;  %v475_v24 = vld [vmem:[#allocation10 + $0x270] sm:$0xff]  ;;  %v470_v25 = vld [vmem:[#allocation10 + $0x248] sm:$0xff]  ;;  %v469_v26 = vld [vmem:[#allocation10 + $0x240] sm:$0xff]  ;;  %s4577_s28 = smov 32   ;;  %vm4578_vm4 = vmmov 0   ;;  %s4579_s4 = smov [#allocation26]  }
  0xc5   :  { %527 = vmatprep.subr.mxu1 %v482_v21  ;;  %v464_v27 = vld [vmem:[#allocation10 + $0x218] sm:$0xff]  ;;  %v463_v28 = vld [vmem:[#allocation10 + $0x210] sm:$0xff]  ;;  %v458_v29 = vld [vmem:[#allocation10 + $0x1e8] sm:$0xff]  ;;  %s3487_s13 = sshll.u32 %s4579_s4, 4  ;;  %s3488_s13 = int_to_ptr.vmem [resolvable:$true] %s3487_s13 }
  0xc6   :  { %528 = vmatpush1.msra.mxu1 %v481_v22  ;;  %v457_v30 = vld [vmem:[#allocation10 + $0x1e0] sm:$0xff]  ;;  %v452_v31 = vld [vmem:[#allocation10 + $0x1b8] sm:$0xff]  ;;  %v451_v32 = vld [vmem:[#allocation10 + $0x1b0] sm:$0xff]  ;;  %s4495_s7 = scalar_lea.vmem %s3488_s13, 128  ;;  %p4500_p6 = scmp.lt.s32.totalorder %s3488_s13, %s3488_s13 }
  0xc7   :  { %258 = vadd.xlane.f32.xlu0 %v257_v3  ;;  %v300_v14 = vld [vmem:[%s5255_s30 + $0x18] sm:$0xff]  ;;  %v299_v15 = vld [vmem:[%s5255_s30 + $0x10] sm:$0xff]  ;;  %v298_v16 = vld [vmem:[%s5255_s30 + $0x8] sm:$0xff]  ;;  %529 = vmatprep.subr.mxu1 %v476_v23  ;;  %p4496_p5 = scmp.ne.s32.totalorder %s3488_s13, %s4495_s7  ;;  %p4501_p7 = scmp.lt.s32.totalorder %s4495_s7, %s4495_s7 }
  0xc8   :  { %3770 = vmatprep.subr.mxu0 %v300_v14  ;;  %v297_v17 = vld [vmem:[%s5255_s30] sm:$0xff]  ;;  %530 = vmatpush1.msra.mxu1 %v475_v24  ;;  %v446_v33 = vld [vmem:[#allocation10 + $0x188] sm:$0xff]  ;;  %v439_v36 = vld [vmem:[#allocation10 + $0x150] sm:$0xff] }
  0xc9   :  { %3771 = vmatpush3.msra.mxu0 %v300_v14  ;;  %531 = vmatprep.subr.mxu1 %v470_v25  ;;  %v445_v34 = vld [vmem:[#allocation10 + $0x180] sm:$0xff]  ;;  %v440_v35 = vld [vmem:[#allocation10 + $0x158] sm:$0xff]  ;;  %v434_v37 = vld [vmem:[#allocation10 + $0x128] sm:$0xff]  ;;  %p4502_p8 = por %p4501_p7, %p4500_p6 }
  0xca   :  { %3772 = vmatprep.subr.mxu0 %v299_v15  ;;  %532 = vmatpush1.msra.mxu1 %v469_v26  ;;  %v433_v38 = vld [vmem:[#allocation10 + $0x120] sm:$0xff]  ;;  %v428_v39 = vld [vmem:[#allocation10 + $0xf8] sm:$0xff]  ;;  %v427_v40 = vld [vmem:[#allocation10 + $0xf0] sm:$0xff] }
  0xcb   :  { %3773 = vmatpush3.msra.mxu0 %v299_v15  ;;  %533 = vmatprep.subr.mxu1 %v464_v27  ;;  %v422_v41 = vld [vmem:[#allocation10 + $0xc8] sm:$0xff]  ;;  %v421_v42 = vld [vmem:[#allocation10 + $0xc0] sm:$0xff]  ;;  %v3517_v50 = vld [vmem:[%s5256_s3] ss:$0 sm:$0xff]  ;;  %p4503_p9 = pnand %p4502_p8, %p4496_p5 }
  0xcc   :  { %3774 = vmatprep.subr.mxu0 %v298_v16  ;;  %534 = vmatpush1.msra.mxu1 %v463_v28  ;;  %v3518_v52 = vld [vmem:[#allocation5] ss:$0 sm:$0xff]  ;;  %v489_v59 = vld [vmem:[#allocation10 + $0x2e0] sm:$0xff]  ;;  %v484_v60 = vld [vmem:[#allocation10 + $0x2b8] sm:$0xff] }
  0xcd   :  { %3775 = vmatpush3.msra.mxu0 %v298_v16  ;;  %535 = vmatprep.subr.mxu1 %v458_v29  ;;  %v483_v61 = vld [vmem:[#allocation10 + $0x2b0] sm:$0xff]  ;;  %v478_v62 = vld [vmem:[#allocation10 + $0x288] sm:$0xff]  ;;  %v477_v63 = vld [vmem:[#allocation10 + $0x280] sm:$0xff] }
  0xce   :  { %3776 = vmatprep.subr.mxu0 %v297_v17  ;;  %536 = vmatpush1.msra.mxu1 %v457_v30  ;;  %v466_v2 = vld [vmem:[#allocation10 + $0x228] sm:$0xff]  ;;  %v465_v3 = vld [vmem:[#allocation10 + $0x220] sm:$0xff]  ;;  %v424_v16 = vld [vmem:[#allocation10 + $0xd8] sm:$0xff] }
  0xcf   :  { %3777 = vmatpush3.msra.mxu0 %v297_v17  ;;  %537 = vmatprep.subr.mxu1 %v452_v31  ;;  %v430_v14 = vld [vmem:[#allocation10 + $0x108] sm:$0xff]  ;;  %v429_v15 = vld [vmem:[#allocation10 + $0x100] sm:$0xff]  ;;  %v416_v17 = vld [vmem:[#allocation10 + $0x98] sm:$0xff] }
  0xd0   :  { %602 = vmatprep.subr.mxu0 %v490_v20  ;;  %538 = vmatpush1.msra.mxu1 %v451_v32  ;;  %v423_v18 = vld [vmem:[#allocation10 + $0xd0] sm:$0xff]  ;;  %v418_v20 = vld [vmem:[#allocation10 + $0xa8] sm:$0xff]  ;;  %v417_v22 = vld [vmem:[#allocation10 + $0xa0] sm:$0xff] }
  0xd1   :  { %539 = vmatprep.subr.mxu1 %v446_v33  ;;  %v415_v19 = vld [vmem:[#allocation10 + $0x90] sm:$0xff]  ;;  %v410_v21 = vld [vmem:[#allocation10 + $0x68] sm:$0xff]  ;;  %v409_v23 = vld [vmem:[#allocation10 + $0x60] sm:$0xff] }
  0xd2   :  { %540 = vmatpush1.msra.mxu1 %v445_v34  ;;  %v412_v24 = vld [vmem:[#allocation10 + $0x78] sm:$0xff]  ;;  %v411_v26 = vld [vmem:[#allocation10 + $0x70] sm:$0xff]  ;;  %v406_v28 = vld [vmem:[#allocation10 + $0x48] sm:$0xff] }
  0xd3   :  { %541 = vmatprep.subr.mxu1 %v440_v35  ;;  %v404_v25 = vld [vmem:[#allocation10 + $0x38] sm:$0xff]  ;;  %v403_v27 = vld [vmem:[#allocation10 + $0x30] sm:$0xff]  ;;  %v398_v29 = vld [vmem:[#allocation10 + $0x8] sm:$0xff]  ;;  %v4574_v35 = vmov 0.0  }
  0xd4   :  { %542 = vmatpush1.msra.mxu1 %v439_v36  ;;  %v405_v30 = vld [vmem:[#allocation10 + $0x40] sm:$0xff]  ;;  %v400_v32 = vld [vmem:[#allocation10 + $0x18] sm:$0xff]  ;;  %v399_v33 = vld [vmem:[#allocation10 + $0x10] sm:$0xff]  ;;  %589 = vmatprep.mubr.f32.mxu1 %v4574_v35 }
  0xd5   :  { %543 = vmatprep.subr.mxu1 %v434_v37  ;;  %v397_v31 = vld [vmem:[#allocation10] sm:$0xff]  ;;  %v492_v34 = vld [vmem:[#allocation10 + $0x2f8] sm:$0xff]  ;;  %v3519_v36 = vld [vmem:[#allocation7] ss:$0 sm:$0xff] }
  0xd6   :  { %544 = vmatpush1.msra.mxu1 %v433_v38 }
  0xd7   :  { %545 = vmatprep.subr.mxu1 %v428_v39 }
  0xd8   :  { %546 = vmatpush1.msra.mxu1 %v427_v40 }
  0xd9   :  { %547 = vmatprep.subr.mxu1 %v422_v41  ;;  %v393_v41 = vld [vmem:[#allocation8] sm:$0xff] }
  0xda   :  { %548 = vmatpush1.msra.mxu1 %v421_v42 }
  0xdb   :  { %549 = vmatprep.subr.mxu1 %v416_v17  ;;  %v4793_v17 = vld [vmem:[#allocation11] sm:$0x3f] }
  0xdc   :  { %550 = vmatpush1.msra.mxu1 %v415_v19 }
  0xdd   :  { %551 = vmatprep.subr.mxu1 %v410_v21 }
  0xde   :  { %552 = vmatpush1.msra.mxu1 %v409_v23 }
  0xdf   :  { %553 = vmatprep.subr.mxu1 %v404_v25 }
  0xe0   :  { %554 = vmatpush1.msra.mxu1 %v403_v27 }
  0xe1   :  { %555 = vmatprep.subr.mxu1 %v398_v29 }
  0xe2   :  { %556 = vmatpush1.msra.mxu1 %v397_v31 }
  0xe3   :  { %679 = vmatprep.subr.mxu1 %v492_v34 }
 0x14c   :  { %v256_v4 = vpop.xlane.xlu0 %255 }
 0x14d   :  { %v261_v5 = vmul.f32 0.03125, %v256_v4  ;;  %v460_v4 = vld [vmem:[#allocation10 + $0x1f8] sm:$0xff] }
 0x14f   :  { %v4745_v6 = vsub.f32 %v249_v0, %v261_v5  ;;  %v472_v0 = vld [vmem:[#allocation10 + $0x258] sm:$0xff]  ;;  %v459_v5 = vld [vmem:[#allocation10 + $0x1f0] sm:$0xff] }
 0x150   :  { %v259_v7 = vpop.xlane.xlu0 %258 }
 0x151   :  { %v262_v8 = vmul.f32 0.03125, %v259_v7  ;;  %v265_v9 = vmul.f32 %v4745_v6, %v4745_v6  ;;  %v453_v7 = vld [vmem:[#allocation10 + $0x1c0] sm:$0xff] }
 0x153   :  { %v4749_v10 = vsub.f32 %v250_v1, %v262_v8  ;;  %v267_v11 = vsel %vm253_vm0, %v265_v9, 0.0  ;;  %v471_v1 = vld [vmem:[#allocation10 + $0x250] sm:$0xff]  ;;  %v448_v8 = vld [vmem:[#allocation10 + $0x198] sm:$0xff] }
 0x154   :  { %268 = vadd.xlane.f32.xlu1 %v267_v11  ;;  %v447_v9 = vld [vmem:[#allocation10 + $0x190] sm:$0xff]  ;;  %v441_v11 = vld [vmem:[#allocation10 + $0x160] sm:$0xff] }
 0x155   :  { %v266_v12 = vmul.f32 %v4749_v10, %v4749_v10 }
 0x157   :  { %v270_v13 = vsel %vm253_vm0, %v266_v12, 0.0  ;;  %v436_v12 = vld [vmem:[#allocation10 + $0x138] sm:$0xff] }
 0x158   :  { %271 = vadd.xlane.f32.xlu1 %v270_v13  ;;  %v435_v13 = vld [vmem:[#allocation10 + $0x130] sm:$0xff] }
 0x1dd   :  { %v269_v43 = vpop.xlane.xlu1 %268 }
 0x1de   :  { %v273_v44 = vmul.f32 0.03125, %v269_v43 }
 0x1e0   :  { %v275_v45 = vadd.f32 1e-05, %v273_v44  ;;  %v491_v44 = vld [vmem:[#allocation10 + $0x2f0] sm:$0xff] }
 0x1e1   :  { %v272_v46 = vpop.xlane.xlu1 %271 }
 0x1e2   :  { %4119 = vrsqrt.f32 %v275_v45  ;;  %v274_v47 = vmul.f32 0.03125, %v272_v46  ;;  %v394_v46 = vld [vmem:[#allocation8 + $0x8] sm:$0xff] }
 0x1e4   :  { %v276_v48 = vadd.f32 1e-05, %v274_v47  ;;  %v486_v47 = vld [vmem:[#allocation10 + $0x2c8] sm:$0xff] }
 0x1e6   :  { %4121 = vrsqrt.f32 %v276_v48  ;;  %v485_v48 = vld [vmem:[#allocation10 + $0x2c0] sm:$0xff] }
 0x1ef   :  { %v4120_v49 = vpop.eup %4119 }
 0x1f0   :  { %v279_v51 = vmul.f32 %v4120_v49, %v4745_v6  ;;  %v454_v6 = vld [vmem:[#allocation10 + $0x1c8] sm:$0xff]  ;;  %v480_v49 = vld [vmem:[#allocation10 + $0x298] sm:$0xff] }
 0x1f2   :  { %v287_v53 = vmul.f32 %v3517_v50, %v279_v51  ;;  %v479_v51 = vld [vmem:[#allocation10 + $0x290] sm:$0xff] }
 0x1f3   :  { %v4122_v54 = vpop.eup %4121 }
 0x1f4   :  { %v280_v55 = vmul.f32 %v4122_v54, %v4749_v10  ;;  %v295_v56 = vadd.f32 %v3518_v52, %v287_v53  ;;  %v442_v10 = vld [vmem:[#allocation10 + $0x168] sm:$0xff]  ;;  %v473_v53 = vld [vmem:[#allocation10 + $0x260] sm:$0xff]  ;;  %v468_v54 = vld [vmem:[#allocation10 + $0x238] sm:$0xff] }
 0x1f6   :  { %v288_v57 = vmul.f32 %v3517_v50, %v280_v55  ;;  %3778 = vmatprep.mubr.msk.f32.mxu0 %vm253_vm0, %v295_v56  ;;  %v467_v55 = vld [vmem:[#allocation10 + $0x230] sm:$0xff]  ;;  %v462_v56 = vld [vmem:[#allocation10 + $0x208] sm:$0xff] }
 0x1f8   :  { %v296_v58 = vadd.f32 %v3518_v52, %v288_v57  ;;  %v474_v52 = vld [vmem:[#allocation10 + $0x268] sm:$0xff]  ;;  %v461_v57 = vld [vmem:[#allocation10 + $0x200] sm:$0xff] }
 0x1fa   :  { %3779 = vmatmul.mubr.msk.f32.vlgmr.msra.gmra.mxu0 %vm253_vm0, %v296_v58  ;;  %v456_v58 = vld [vmem:[#allocation10 + $0x1d8] sm:$0xff] }
 0x1fb   :  { %603 = vmatpush1.msra.mxu0 %v489_v59  ;;  %666 = vmatprep.mubr.f32.mxu0 %v4574_v35  ;;  %v455_v59 = vld [vmem:[#allocation10 + $0x1d0] sm:$0xff] }
 0x1fc   :  { %604 = vmatprep.subr.mxu0 %v484_v60  ;;  %v450_v60 = vld [vmem:[#allocation10 + $0x1a8] sm:$0xff] }
 0x1fd   :  { %605 = vmatpush1.msra.mxu0 %v483_v61  ;;  %v449_v61 = vld [vmem:[#allocation10 + $0x1a0] sm:$0xff] }
 0x1fe   :  { %606 = vmatprep.subr.mxu0 %v478_v62  ;;  %v444_v62 = vld [vmem:[#allocation10 + $0x178] sm:$0xff] }
 0x1ff   :  { %607 = vmatpush1.msra.mxu0 %v477_v63  ;;  %v443_v63 = vld [vmem:[#allocation10 + $0x170] sm:$0xff] }
 0x200   :  { %608 = vmatprep.subr.mxu0 %v472_v0  ;;  %v438_v0 = vld [vmem:[#allocation10 + $0x148] sm:$0xff] }
 0x201   :  { %609 = vmatpush1.msra.mxu0 %v471_v1  ;;  %v437_v1 = vld [vmem:[#allocation10 + $0x140] sm:$0xff] }
 0x202   :  { %610 = vmatprep.subr.mxu0 %v466_v2  ;;  %v432_v2 = vld [vmem:[#allocation10 + $0x118] sm:$0xff] }
 0x203   :  { %611 = vmatpush1.msra.mxu0 %v465_v3  ;;  %v431_v3 = vld [vmem:[#allocation10 + $0x110] sm:$0xff] }
 0x204   :  { %612 = vmatprep.subr.mxu0 %v460_v4  ;;  %v426_v4 = vld [vmem:[#allocation10 + $0xe8] sm:$0xff] }
 0x205   :  { %613 = vmatpush1.msra.mxu0 %v459_v5  ;;  %v425_v5 = vld [vmem:[#allocation10 + $0xe0] sm:$0xff] }
 0x206   :  { %614 = vmatprep.subr.mxu0 %v454_v6  ;;  %v420_v6 = vld [vmem:[#allocation10 + $0xb8] sm:$0xff] }
 0x207   :  { %615 = vmatpush1.msra.mxu0 %v453_v7  ;;  %v419_v7 = vld [vmem:[#allocation10 + $0xb0] sm:$0xff] }
 0x208   :  { %616 = vmatprep.subr.mxu0 %v448_v8  ;;  %v414_v8 = vld [vmem:[#allocation10 + $0x88] sm:$0xff] }
 0x209   :  { %617 = vmatpush1.msra.mxu0 %v447_v9  ;;  %v413_v9 = vld [vmem:[#allocation10 + $0x80] sm:$0xff] }
 0x20a   :  { %618 = vmatprep.subr.mxu0 %v442_v10  ;;  %v408_v10 = vld [vmem:[#allocation10 + $0x58] sm:$0xff] }
 0x20b   :  { %619 = vmatpush1.msra.mxu0 %v441_v11  ;;  %v407_v11 = vld [vmem:[#allocation10 + $0x50] sm:$0xff] }
 0x20c   :  { %620 = vmatprep.subr.mxu0 %v436_v12  ;;  %v402_v12 = vld [vmem:[#allocation10 + $0x28] sm:$0xff] }
 0x20d   :  { %621 = vmatpush1.msra.mxu0 %v435_v13  ;;  %v401_v13 = vld [vmem:[#allocation10 + $0x20] sm:$0xff] }
 0x20e   :  { %622 = vmatprep.subr.mxu0 %v430_v14  ;;  %v495_v14 = vlaneseq }
 0x20f   :  { %623 = vmatpush1.msra.mxu0 %v429_v15 }
 0x210   :  { %624 = vmatprep.subr.mxu0 %v424_v16  ;;  %v4790_v15 = vshrl.u32 %v495_v14, 7 }
 0x211   :  { %625 = vmatpush1.msra.mxu0 %v423_v18 }
 0x212   :  { %626 = vmatprep.subr.mxu0 %v418_v20  ;;  %v497_v16 = vsub.s32 0, %v4790_v15  ;;  %v505_v20 = vsub.s32 2, %v4790_v15  ;;  %v517_v31 = vsub.s32 5, %v4790_v15 }
 0x213   :  { %627 = vmatpush1.msra.mxu0 %v417_v22 }
 0x214   :  { %628 = vmatprep.subr.mxu0 %v412_v24  ;;  %v498_v18 = vrot.slane %v4793_v17, %v497_v16  ;;  %v506_v24 = vrot.slane %v4793_v17, %v505_v20  ;;  %v4827_v34 = vrot.slane %v4793_v17, %v517_v31 }
 0x215   :  { %629 = vmatpush1.msra.mxu0 %v411_v26 }
 0x216   :  { %630 = vmatprep.subr.mxu0 %v406_v28 }
 0x217   :  { %631 = vmatpush1.msra.mxu0 %v405_v30 }
 0x218   :  { %632 = vmatprep.subr.mxu0 %v400_v32 }
 0x219   :  { %633 = vmatpush1.msra.mxu0 %v399_v33  ;;  %v513_v33 = vsub.s32 4, %v4790_v15 }
 0x2ba   :  { %v3780_v37 = vpop.f32.mrf.mxu0 }
 0x2bb   :  { %v386_v38 = vadd.f32 %v3780_v37, %v3519_v36 }
 0x2bc   :  { %v380_v39 = vpop.f32.mrf.mxu0 }
 0x2bd   :  { %v381_v40 = vadd.f32 %v3519_v36, %v380_v39  ;;  %vm390_vm1 = vcmp.ne.f32.partialorder %v386_v38, %v386_v38 }
 0x2be   :  { %v392_v45 = vsel %vm390_vm1, 0.0, %v386_v38  ;;  %v514_v38 = vrot.slane %v4793_v17, %v513_v33 }
 0x2bf   :  { %vm389_vm2 = vcmp.ne.f32.partialorder %v381_v40, %v381_v40  ;;  %v4781_v50 = vadd.f32 %v394_v46, %v392_v45 }
 0x2c0   :  { %v391_v42 = vsel %vm389_vm2, 0.0, %v381_v40 }
 0x2c1   :  { %v4776_v43 = vadd.f32 %v393_v41, %v391_v42 }
 0x2c3   :  { %590 = vmatmul.mubr.f32.vlgmr.msra.gmra.mxu1 %v4776_v43  ;;  %667 = vmatmul.mubr.f32.vlgmr.msra.gmra.mxu0 %v4776_v43 }
 0x2c4   :  { %680 = vmatpush1.msra.mxu1 %v491_v44  ;;  %595 = vmatprep.mubr.f32.mxu1 %v4574_v35 }
 0x2c5   :  { %681 = vmatprep.subr.mxu1 %v486_v47  ;;  %672 = vmatprep.mubr.f32.mxu0 %v4574_v35 }
 0x2c6   :  { %682 = vmatpush1.msra.mxu1 %v485_v48 }
 0x2c7   :  { %683 = vmatprep.subr.mxu1 %v480_v49  ;;  %596 = vmatmul.mubr.f32.gmra.mxu1 %v4781_v50 }
 0x2c8   :  { %673 = vmatmul.mubr.f32.gmra.mxu0 %v4781_v50  ;;  %684 = vmatpush1.msra.mxu1 %v479_v51 }
 0x2c9   :  { %685 = vmatprep.subr.mxu1 %v474_v52  ;;  %743 = vmatprep.mubr.f32.mxu1 %v4574_v35 }
 0x2ca   :  { %686 = vmatpush1.msra.mxu1 %v473_v53 }
 0x2cb   :  { %687 = vmatprep.subr.mxu1 %v468_v54 }
 0x2cc   :  { %688 = vmatpush1.msra.mxu1 %v467_v55 }
 0x2cd   :  { %689 = vmatprep.subr.mxu1 %v462_v56 }
 0x2ce   :  { %690 = vmatpush1.msra.mxu1 %v461_v57 }
 0x2cf   :  { %691 = vmatprep.subr.mxu1 %v456_v58 }
 0x2d0   :  { %692 = vmatpush1.msra.mxu1 %v455_v59 }
 0x2d1   :  { %693 = vmatprep.subr.mxu1 %v450_v60  ;;  %v759_v60 = vld [vmem:[#allocation13 + $0x18] sm:$0xff] }
 0x2d2   :  { %694 = vmatpush1.msra.mxu1 %v449_v61  ;;  %v758_v61 = vld [vmem:[#allocation13 + $0x10] sm:$0xff] }
 0x2d3   :  { %695 = vmatprep.subr.mxu1 %v444_v62 }
 0x2d4   :  { %696 = vmatpush1.msra.mxu1 %v443_v63 }
 0x2d5   :  { %697 = vmatprep.subr.mxu1 %v438_v0 }
 0x2d6   :  { %698 = vmatpush1.msra.mxu1 %v437_v1 }
 0x2d7   :  { %699 = vmatprep.subr.mxu1 %v432_v2 }
 0x2d8   :  { %700 = vmatpush1.msra.mxu1 %v431_v3 }
 0x2d9   :  { %701 = vmatprep.subr.mxu1 %v426_v4 }
 0x2da   :  { %702 = vmatpush1.msra.mxu1 %v425_v5 }
 0x2db   :  { %703 = vmatprep.subr.mxu1 %v420_v6 }
 0x2dc   :  { %704 = vmatpush1.msra.mxu1 %v419_v7 }
 0x2dd   :  { %705 = vmatprep.subr.mxu1 %v414_v8  ;;  %v757_v8 = vld [vmem:[#allocation13 + $0x8] sm:$0xff] }
 0x2de   :  { %706 = vmatpush1.msra.mxu1 %v413_v9  ;;  %v756_v9 = vld [vmem:[#allocation13] sm:$0xff] }
 0x2df   :  { %707 = vmatprep.subr.mxu1 %v408_v10 }
 0x2e0   :  { %708 = vmatpush1.msra.mxu1 %v407_v11 }
 0x2e1   :  { %709 = vmatprep.subr.mxu1 %v402_v12 }
 0x2e2   :  { %710 = vmatpush1.msra.mxu1 %v401_v13 }
 0x2e3   :  { %744 = vmatmul.mubr.f32.vlgmr.msra.gmra.mxu1 %v4776_v43  ;;  %3820 = vmatprep.subr.mxu1 %v759_v60 }
 0x2e4   :  { %749 = vmatprep.mubr.f32.mxu1 %v4574_v35  ;;  %3821 = vmatpush3.msra.mxu1 %v759_v60 }
 0x2e5   :  { %3822 = vmatprep.subr.mxu1 %v758_v61 }
 0x2e6   :  { %3823 = vmatpush3.msra.mxu1 %v758_v61 }
 0x2e7   :  { %750 = vmatmul.mubr.f32.gmra.mxu1 %v4781_v50  ;;  %3824 = vmatprep.subr.mxu1 %v757_v8 }
 0x2e8   :  { %3825 = vmatpush3.msra.mxu1 %v757_v8 }
 0x2e9   :  { %3826 = vmatprep.subr.mxu1 %v756_v9 }
 0x2ea   :  { %3827 = vmatpush3.msra.mxu1 %v756_v9 }
 0x383   :  { %v591_v19 = vpop.f32.mrf.mxu1  ;;  %v668_v21 = vpop.f32.mrf.mxu0 }
 0x384   :  { %v4797_v22 = vadd.f32 %v591_v19, %v498_v18  ;;  %v4808_v28 = vadd.f32 %v668_v21, %v506_v24 }
 0x385   :  { %v4799_v23 = vpop.f32.mrf.mxu0  ;;  %v4806_v27 = vpop.f32.mrf.mxu1 }
 0x386   :  { %3785 = vmatprep.mubr.msk.f32.mxu0 %vm253_vm0, %v4797_v22 }
 0x387   :  { %v597_v29 = vpop.f32.mrf.mxu1 }
 0x388   :  { %v674_v25 = vpop.f32.mrf.mxu0  ;;  %v4818_v30 = vadd.f32 %v597_v29, %v498_v18 }
 0x389   :  { %v4804_v26 = vadd.f32 %v674_v25, %v506_v24  ;;  %v4823_v32 = vpop.f32.mrf.mxu1 }
 0x38a   :  { %v4841_v44 = vpop.f32.mrf.mxu0 }
 0x38b   :  { %3781 = vmatprep.subr.msk.mxu0 %vm253_vm0, %v4804_v26 }
 0x38c   :  { %3782 = vmatpush3.xpose.msk.msra.mxu0 %vm253_vm0, %v4804_v26 }
 0x38d   :  { %3783 = vmatprep.subr.msk.mxu0 %vm253_vm0, %v4808_v28 }
 0x390   :  { %3784 = vmatpush3.xpose.msk.msra.mxu0 %vm253_vm0, %v4808_v28 }
 0x393   :  { %3786 = vmatmul.mubr.msk.f32.vlgmr.msra.gmra.mxu0 %vm253_vm0, %v4818_v30 }
 0x3a3   :  { %v745_v36 = vpop.f32.mrf.mxu1 }
 0x3a4   :  { %v4835_v42 = vadd.f32 %v745_v36, %v514_v38 }
 0x3a5   :  { %v747_v37 = vpop.f32.mrf.mxu1 }
 0x3a6   :  { %v4831_v39 = vadd.f32 %v747_v37, %v4827_v34 }
 0x3a7   :  { %v751_v40 = vpop.f32.mrf.mxu1 }
 0x3a8   :  { %v4833_v41 = vadd.f32 %v751_v40, %v514_v38 }
 0x3aa   :  { %3788 = vmatprep.subr.mxu0 %v4833_v41 }
 0x3ab   :  { %3789 = vmatpush3.msra.mxu0 %v4833_v41 }
 0x3ac   :  { %3790 = vmatprep.subr.mxu0 %v4835_v42 }
 0x3ad   :  { %3791 = vmatpush3.msra.mxu0 %v4835_v42 }
 0x453   :  { %v3787_v45 = vpop.f32.mrf.mxu0 }
 0x454   :  { %v879_v46 = vsel %vm875_vm3, %v3787_v45, -inf }
 0x455   :  { %880 = vmax.xlane.f32.xlu1 %v879_v46  ;;  %v866_v47 = vpop.f32.mrf.mxu0  ;;  %v763_v46 = vld [vmem:[#allocation13 + $0x38] sm:$0xff] }
 0x456   :  { %v876_v48 = vsel %vm875_vm3, %v866_v47, -inf }
 0x457   :  { %877 = vmax.xlane.f32.xlu0 %v876_v48 }
 0x4de   :  { %v881_v49 = vpop.xlane.xlu1 %880 }
 0x4df   :  { %v883_v51 = vsub.f32 %v3787_v45, %v881_v49 }
 0x4e0   :  { %v878_v52 = vpop.xlane.xlu0 %877 }
 0x4e1   :  { %v886_v53 = vmul.f32 1.442695, %v883_v51  ;;  %v882_v54 = vsub.f32 %v866_v47, %v878_v52  ;;  %v762_v52 = vld [vmem:[#allocation13 + $0x30] sm:$0xff] }
 0x4e3   :  { %4123 = vpow2.f32 %v886_v53  ;;  %v884_v55 = vmul.f32 1.442695, %v882_v54  ;;  %v761_v53 = vld [vmem:[#allocation13 + $0x28] sm:$0xff]  ;;  %v760_v54 = vld [vmem:[#allocation13 + $0x20] sm:$0xff] }
 0x4e5   :  { %4125 = vpow2.f32 %v884_v55 }
 0x4f0   :  { %v4124_v56 = vpop.eup %4123 }
 0x4f1   :  { %v891_v57 = vsel %vm875_vm3, %v4124_v56, 0.0 }
 0x4f2   :  { %v4126_v58 = vpop.eup %4125  ;;  %892 = vadd.xlane.f32.xlu1 %v891_v57 }
 0x4f3   :  { %v888_v59 = vsel %vm875_vm3, %v4126_v58, 0.0 }
 0x4f4   :  { %889 = vadd.xlane.f32.xlu0 %v888_v59 }
 0x503   :  { %983 = vrot.lane.b32.xlu1 %v4808_v28, %s4575_s9 }
 0x507   :  { %979 = vrot.lane.b32.xlu1 %v4797_v22, %s4575_s9 }
 0x50a   :  { %985 = vrot.lane.b32.xlu0 %v4804_v26, %s4575_s9 }
 0x50b   :  { %981 = vrot.lane.b32.xlu1 %v4818_v30, %s4575_s9 }
 0x57b   :  { %v893_v62 = vpop.xlane.xlu1 %892 }
 0x57c   :  { %4127 = vrcp.f32 %v893_v62 }
 0x57d   :  { %v890_v63 = vpop.xlane.xlu0 %889 }
 0x57e   :  { %4129 = vrcp.f32 %v890_v63 }
 0x57f   :  { %v984_v1 = vpop.permute.xlu1 %983 }
 0x581   :  { %v986_v0 = vpop.permute.xlu0 %985 }
 0x582   :  { %3795 = vmatprep.subr.msk.mxu0 %vm253_vm0, %v986_v0 }
 0x583   :  { %v980_v6 = vpop.permute.xlu1 %979 }
 0x587   :  { %v982_v7 = vpop.permute.xlu1 %981 }
 0x589   :  { %v4128_v2 = vpop.eup %4127 }
 0x58a   :  { %v897_v5 = vmul.f32 %v4128_v2, %v4124_v56 }
 0x58b   :  { %v4130_v3 = vpop.eup %4129 }
 0x58c   :  { %v896_v4 = vmul.f32 %v4130_v3, %v4126_v58  ;;  %v767_v3 = vld [vmem:[#allocation13 + $0x58] sm:$0xff] }
 0x58e   :  { %3792 = vmatprep.mubr.msk.f32.mxu0 %vm875_vm3, %v896_v4  ;;  %v766_v4 = vld [vmem:[#allocation13 + $0x50] sm:$0xff] }
 0x58f   :  { %3793 = vmatmul.mubr.msk.f32.vlgmr.msra.gmra.mxu0 %vm875_vm3, %v897_v5  ;;  %v765_v5 = vld [vmem:[#allocation13 + $0x48] sm:$0xff] }
 0x590   :  { %3796 = vmatpush3.xpose.msk.msra.mxu0 %vm253_vm0, %v986_v0  ;;  %3799 = vmatprep.mubr.msk.f32.mxu0 %vm253_vm0, %v980_v6  ;;  %v764_v6 = vld [vmem:[#allocation13 + $0x40] sm:$0xff] }
 0x591   :  { %3797 = vmatprep.subr.msk.mxu0 %vm253_vm0, %v984_v1 }
 0x594   :  { %3798 = vmatpush3.xpose.msk.msra.mxu0 %vm253_vm0, %v984_v1 }
 0x597   :  { %3800 = vmatmul.mubr.msk.f32.vlgmr.msra.gmra.mxu0 %vm253_vm0, %v982_v7 }
 0x64f   :  { %v3794_v10 = vpop.f32.mrf.mxu0 }
 0x651   :  { %v970_v11 = vpop.f32.mrf.mxu0 }
 0x652   :  { %3828 = vmatprep.mubr.msk.f32.mxu1 %vm253_vm0, %v970_v11 }
 0x653   :  { %3829 = vmatmul.mubr.msk.f32.vlgmr.msra.gmra.mxu1 %vm253_vm0, %v3794_v10 }
 0x657   :  { %v3801_v12 = vpop.f32.mrf.mxu0 }
 0x658   :  { %v1073_v13 = vsel %vm875_vm3, %v3801_v12, -inf }
 0x659   :  { %1074 = vmax.xlane.f32.xlu1 %v1073_v13  ;;  %v1061_v14 = vpop.f32.mrf.mxu0 }
 0x65a   :  { %v1070_v16 = vsel %vm875_vm3, %v1061_v14, -inf }
 0x65b   :  { %1071 = vmax.xlane.f32.xlu0 %v1070_v16 }
 0x66a   :  { %1094 = vrot.lane.b32.xlu1 %v4835_v42, %s4575_s9 }
 0x66e   :  { %1349 = vrot.lane.b32.xlu1 %v4804_v26, %s4576_s25 }
 0x672   :  { %1347 = vrot.lane.b32.xlu1 %v4808_v28, %s4576_s25 }
 0x676   :  { %1345 = vrot.lane.b32.xlu1 %v4818_v30, %s4576_s25 }
 0x6e2   :  { %v1075_v18 = vpop.xlane.xlu1 %1074 }
 0x6e3   :  { %v1077_v19 = vsub.f32 %v3801_v12, %v1075_v18 }
 0x6e4   :  { %v1072_v20 = vpop.xlane.xlu0 %1071 }
 0x6e5   :  { %v1080_v21 = vmul.f32 1.442695, %v1077_v19  ;;  %v1076_v24 = vsub.f32 %v1061_v14, %v1072_v20 }
 0x6e6   :  { %v1095_v45 = vpop.permute.xlu1 %1094 }
 0x6e7   :  { %4131 = vpow2.f32 %v1080_v21  ;;  %v1078_v25 = vmul.f32 1.442695, %v1076_v24 }
 0x6e9   :  { %4133 = vpow2.f32 %v1078_v25 }
 0x6ea   :  { %v1350_v55 = vpop.permute.xlu1 %1349 }
 0x6ee   :  { %v1348_v59 = vpop.permute.xlu1 %1347 }
 0x6f2   :  { %v1346_v60 = vpop.permute.xlu1 %1345 }
 0x6f4   :  { %v4132_v29 = vpop.eup %4131 }
 0x6f5   :  { %v1085_v31 = vsel %vm875_vm3, %v4132_v29, 0.0 }
 0x6f6   :  { %v4134_v33 = vpop.eup %4133  ;;  %1086 = vadd.xlane.f32.xlu0 %v1085_v31  ;;  %v753_v31 = vpop.f32.mrf.mxu1 }
 0x6f7   :  { %v1082_v36 = vsel %vm875_vm3, %v4134_v33, 0.0 }
 0x6fa   :  { %1083 = vadd.xlane.f32.xlu0 %v1082_v36 }
 0x710   :  { %1096 = vrot.lane.b32.xlu0 %v4833_v41, %s4575_s9 }
 0x714   :  { %1343 = vrot.lane.b32.xlu0 %v4797_v22, %s4576_s25 }
 0x77f   :  { %v1087_v37 = vpop.xlane.xlu0 %1086 }
 0x780   :  { %4135 = vrcp.f32 %v1087_v37 }
 0x783   :  { %v1084_v38 = vpop.xlane.xlu0 %1083 }
 0x784   :  { %4137 = vrcp.f32 %v1084_v38 }
 0x787   :  { %v1097_v40 = vpop.permute.xlu0 %1096 }
 0x788   :  { %3802 = vmatprep.subr.mxu0 %v1097_v40 }
 0x789   :  { %3803 = vmatpush3.msra.mxu0 %v1097_v40 }
 0x78a   :  { %3804 = vmatprep.subr.mxu0 %v1095_v45 }
 0x78b   :  { %3805 = vmatpush3.msra.mxu0 %v1095_v45  ;;  %v1344_v58 = vpop.permute.xlu0 %1343  ;;  %v771_v45 = vld [vmem:[#allocation13 + $0x78] sm:$0xff] }
 0x78c   :  { %3809 = vmatprep.subr.mxu0 %v763_v46 }
 0x78d   :  { %v4136_v47 = vpop.eup %4135 }
 0x78e   :  { %v1091_v51 = vmul.f32 %v4136_v47, %v4132_v29  ;;  %v770_v47 = vld [vmem:[#allocation13 + $0x70] sm:$0xff] }
 0x791   :  { %v4138_v48 = vpop.eup %4137 }
 0x792   :  { %v1090_v49 = vmul.f32 %v4138_v48, %v4134_v33  ;;  %v3830_v33 = vpop.f32.mrf.mxu1  ;;  %v769_v48 = vld [vmem:[#allocation13 + $0x68] sm:$0xff] }
 0x794   :  { %3806 = vmatprep.mubr.msk.f32.mxu0 %vm875_vm3, %v1090_v49  ;;  %v768_v49 = vld [vmem:[#allocation13 + $0x60] sm:$0xff] }
 0x795   :  { %3807 = vmatmul.mubr.msk.f32.vlgmr.msra.gmra.mxu0 %vm875_vm3, %v1091_v51  ;;  %v4922_v51 = vadd.f32 %v753_v31, %v4827_v34 }
 0x796   :  { %3810 = vmatpush3.msra.mxu0 %v763_v46 }
 0x797   :  { %3811 = vmatprep.subr.mxu0 %v762_v52 }
 0x798   :  { %3812 = vmatpush3.msra.mxu0 %v762_v52 }
 0x799   :  { %3813 = vmatprep.subr.mxu0 %v761_v53 }
 0x79a   :  { %3814 = vmatpush3.msra.mxu0 %v761_v53 }
 0x79b   :  { %3815 = vmatprep.subr.mxu0 %v760_v54 }
 0x79c   :  { %3816 = vmatpush3.msra.mxu0 %v760_v54 }
 0x79d   :  { %3831 = vmatprep.subr.msk.mxu0 %vm253_vm0, %v1350_v55 }
 0x855   :  { %v3808_v56 = vpop.f32.mrf.mxu0 }
 0x857   :  { %v1172_v57 = vpop.f32.mrf.mxu0 }
 0x858   :  { %3817 = vmatprep.mubr.msk.f32.mxu0 %vm253_vm0, %v1172_v57 }
 0x859   :  { %3818 = vmatmul.mubr.msk.f32.vlgmr.msra.gmra.mxu0 %vm253_vm0, %v3808_v56 }
 0x85a   :  { %3832 = vmatpush3.xpose.msk.msra.mxu0 %vm253_vm0, %v1350_v55  ;;  %3835 = vmatprep.mubr.msk.f32.mxu0 %vm253_vm0, %v1344_v58 }
 0x85b   :  { %3833 = vmatprep.subr.msk.mxu0 %vm253_vm0, %v1348_v59 }
 0x85e   :  { %3834 = vmatpush3.xpose.msk.msra.mxu0 %vm253_vm0, %v1348_v59 }
 0x85f   :  { %3845 = vmatprep.subr.mxu0 %v767_v3 }
 0x861   :  { %3836 = vmatmul.mubr.msk.f32.vlgmr.msra.gmra.mxu0 %vm253_vm0, %v1346_v60 }
 0x862   :  { %3846 = vmatpush3.msra.mxu0 %v767_v3 }
 0x863   :  { %3847 = vmatprep.subr.mxu0 %v766_v4 }
 0x864   :  { %3848 = vmatpush3.msra.mxu0 %v766_v4 }
 0x865   :  { %3849 = vmatprep.subr.mxu0 %v765_v5 }
 0x866   :  { %3850 = vmatpush3.msra.mxu0 %v765_v5 }
 0x867   :  { %3851 = vmatprep.subr.mxu0 %v764_v6 }
 0x868   :  { %3852 = vmatpush3.msra.mxu0 %v764_v6 }
 0x919   :  { %v4891_v61 = vpop.f32.mrf.mxu0 }
 0x91a   :  { %v1340_v52 = vadd.f32 %v3830_v33, %v4891_v61 }
 0x91b   :  { %v4893_v62 = vpop.f32.mrf.mxu0 }
 0x921   :  { %v3837_v63 = vpop.f32.mrf.mxu0 }
 0x922   :  { %v1437_v0 = vsel %vm875_vm3, %v3837_v63, -inf }
 0x923   :  { %1438 = vmax.xlane.f32.xlu1 %v1437_v0  ;;  %v1425_v1 = vpop.f32.mrf.mxu0 }
 0x924   :  { %v1434_v2 = vsel %vm875_vm3, %v1425_v1, -inf }
 0x925   :  { %1435 = vmax.xlane.f32.xlu0 %v1434_v2 }
 0x934   :  { %1456 = vrot.lane.b32.xlu1 %v4835_v42, %s4576_s25 }
 0x938   :  { %1632 = vrot.lane.b32.xlu1 %v4804_v26, %s4577_s28 }
 0x93c   :  { %1630 = vrot.lane.b32.xlu1 %v4808_v28, %s4577_s28 }
 0x940   :  { %1628 = vrot.lane.b32.xlu1 %v4818_v30, %s4577_s28 }
 0x9ac   :  { %v1439_v7 = vpop.xlane.xlu1 %1438 }
 0x9ad   :  { %v1441_v8 = vsub.f32 %v3837_v63, %v1439_v7 }
 0x9ae   :  { %v1436_v9 = vpop.xlane.xlu0 %1435 }
 0x9af   :  { %v1444_v10 = vmul.f32 1.442695, %v1441_v8  ;;  %v1440_v11 = vsub.f32 %v1425_v1, %v1436_v9  ;;  %v509_v8 = vsub.s32 3, %v4790_v15 }
 0x9b0   :  { %v1457_v12 = vpop.permute.xlu1 %1456 }
 0x9b1   :  { %4139 = vpow2.f32 %v1444_v10  ;;  %v1442_v13 = vmul.f32 1.442695, %v1440_v11  ;;  %v510_v10 = vrot.slane %v4793_v17, %v509_v8 }
 0x9b3   :  { %4141 = vpow2.f32 %v1442_v13  ;;  %v501_v13 = vsub.s32 1, %v4790_v15 }
 0x9b4   :  { %v1633_v14 = vpop.permute.xlu1 %1632 }
 0x9b5   :  { %3856 = vmatprep.subr.msk.mxu0 %vm253_vm0, %v1633_v14 }
 0x9b8   :  { %v1631_v40 = vpop.permute.xlu1 %1630 }
 0x9bc   :  { %v1629_v46 = vpop.permute.xlu1 %1628 }
 0x9be   :  { %v4140_v16 = vpop.eup %4139 }
 0x9bf   :  { %v1449_v26 = vsel %vm875_vm3, %v4140_v16, 0.0 }
 0x9c0   :  { %v4142_v18 = vpop.eup %4141  ;;  %1450 = vadd.xlane.f32.xlu0 %v1449_v26 }
 0x9c1   :  { %v1446_v28 = vsel %vm875_vm3, %v4142_v18, 0.0 }
 0x9c4   :  { %1447 = vadd.xlane.f32.xlu0 %v1446_v28 }
 0x9da   :  { %1458 = vrot.lane.b32.xlu0 %v4833_v41, %s4576_s25 }
 0x9de   :  { %1626 = vrot.lane.b32.xlu0 %v4797_v22, %s4577_s28  ;;  %v1334_v22 = vpop.f32.mrf.mxu1 }
 0x9df   :  { %v1335_v54 = vadd.f32 %v1334_v22, %v4893_v62 }
 0xa49   :  { %v1451_v30 = vpop.xlane.xlu0 %1450 }
 0xa4a   :  { %4143 = vrcp.f32 %v1451_v30 }
 0xa4d   :  { %v1448_v19 = vpop.xlane.xlu0 %1447 }
 0xa4e   :  { %4145 = vrcp.f32 %v1448_v19 }
 0xa51   :  { %v1459_v20 = vpop.permute.xlu0 %1458 }
 0xa52   :  { %3838 = vmatprep.subr.mxu1 %v1459_v20 }
 0xa53   :  { %3839 = vmatpush3.msra.mxu1 %v1459_v20 }
 0xa54   :  { %3840 = vmatprep.subr.mxu1 %v1457_v12 }
 0xa55   :  { %3841 = vmatpush3.msra.mxu1 %v1457_v12  ;;  %v1627_v38 = vpop.permute.xlu0 %1626  ;;  %v4942_v12 = vadd.f32 %v4841_v44, %v510_v10  ;;  %v4953_v44 = vadd.f32 %v4799_v23, %v510_v10 }
 0xa57   :  { %v4144_v21 = vpop.eup %4143 }
 0xa58   :  { %v1455_v29 = vmul.f32 %v4144_v21, %v4140_v16 }
 0xa5b   :  { %v4146_v24 = vpop.eup %4145 }
 0xa5c   :  { %v1454_v25 = vmul.f32 %v4146_v24, %v4142_v18 }
 0xa5e   :  { %3842 = vmatprep.mubr.msk.f32.mxu1 %vm875_vm3, %v1454_v25 }
 0xa5f   :  { %3843 = vmatmul.mubr.msk.f32.vlgmr.msra.gmra.mxu1 %vm875_vm3, %v1455_v29 }
 0xb1f   :  { %v3844_v36 = vpop.f32.mrf.mxu1 }
 0xb21   :  { %v1534_v37 = vpop.f32.mrf.mxu1 }
 0xb22   :  { %3853 = vmatprep.mubr.msk.f32.mxu0 %vm253_vm0, %v1534_v37 }
 0xb23   :  { %3854 = vmatmul.mubr.msk.f32.vlgmr.msra.gmra.mxu0 %vm253_vm0, %v3844_v36 }
 0xb24   :  { %3857 = vmatpush3.xpose.msk.msra.mxu0 %vm253_vm0, %v1633_v14  ;;  %3860 = vmatprep.mubr.msk.f32.mxu0 %vm253_vm0, %v1627_v38  ;;  %v502_v14 = vrot.slane %v4793_v17, %v501_v13 }
 0xb25   :  { %3858 = vmatprep.subr.msk.mxu0 %vm253_vm0, %v1631_v40 }
 0xb26   :  { %v4949_v28 = vadd.f32 %v4806_v27, %v502_v14  ;;  %v4965_v15 = vadd.f32 %v4823_v32, %v502_v14 }
 0xb28   :  { %3859 = vmatpush3.xpose.msk.msra.mxu0 %vm253_vm0, %v1631_v40 }
 0xb29   :  { %3870 = vmatprep.subr.mxu0 %v771_v45 }
 0xb2b   :  { %3861 = vmatmul.mubr.msk.f32.vlgmr.msra.gmra.mxu0 %vm253_vm0, %v1629_v46  ;;  %v774_v46 = vld [vmem:[#allocation13 + $0x90] sm:$0xff] }
 0xb2c   :  { %3871 = vmatpush3.msra.mxu0 %v771_v45  ;;  %v775_v45 = vld [vmem:[#allocation13 + $0x98] sm:$0xff] }
 0xb2d   :  { %3872 = vmatprep.subr.mxu0 %v770_v47 }
 0xb2e   :  { %3873 = vmatpush3.msra.mxu0 %v770_v47 }
 0xb2f   :  { %3874 = vmatprep.subr.mxu0 %v769_v48 }
 0xb30   :  { %3875 = vmatpush3.msra.mxu0 %v769_v48 }
 0xb31   :  { %3876 = vmatprep.subr.mxu0 %v768_v49 }
 0xb32   :  { %3877 = vmatpush3.msra.mxu0 %v768_v49 }
 0xb33   :  { %3888 = vmatprep.subr.mxu0 %v4922_v51 }
 0xbe3   :  { %v3855_v53 = vpop.f32.mrf.mxu0 }
 0xbe4   :  { %v4927_v55 = vadd.f32 %v3855_v53, %v1340_v52 }
 0xbe5   :  { %v1615_v56 = vpop.f32.mrf.mxu0 }
 0xbe6   :  { %v4929_v57 = vadd.f32 %v1615_v56, %v1335_v54 }
 0xbeb   :  { %v3862_v58 = vpop.f32.mrf.mxu0 }
 0xbec   :  { %v1720_v59 = vsel %vm875_vm3, %v3862_v58, -inf }
 0xbed   :  { %1721 = vmax.xlane.f32.xlu1 %v1720_v59  ;;  %v1708_v34 = vpop.f32.mrf.mxu0 }
 0xbee   :  { %v1717_v60 = vsel %vm875_vm3, %v1708_v34, -inf }
 0xbef   :  { %1718 = vmax.xlane.f32.xlu0 %v1717_v60  ;;  %v772_v60 = vld [vmem:[#allocation13 + $0x80] sm:$0xff] }
 0xbfe   :  { %1739 = vrot.lane.b32.xlu1 %v4835_v42, %s4577_s28 }
 0xc76   :  { %v1722_v61 = vpop.xlane.xlu1 %1721 }
 0xc77   :  { %v1724_v63 = vsub.f32 %v3862_v58, %v1722_v61 }
 0xc78   :  { %v1719_v0 = vpop.xlane.xlu0 %1718 }
 0xc79   :  { %v1727_v62 = vmul.f32 1.442695, %v1724_v63  ;;  %v1723_v1 = vsub.f32 %v1708_v34, %v1719_v0  ;;  %v773_v34 = vld [vmem:[#allocation13 + $0x88] sm:$0xff] }
 0xc7a   :  { %v1740_v11 = vpop.permute.xlu1 %1739 }
 0xc7b   :  { %4147 = vpow2.f32 %v1727_v62  ;;  %v1725_v2 = vmul.f32 1.442695, %v1723_v1 }
 0xc7d   :  { %4149 = vpow2.f32 %v1725_v2 }
 0xc88   :  { %v4148_v3 = vpop.eup %4147 }
 0xc89   :  { %v1732_v4 = vsel %vm875_vm3, %v4148_v3, 0.0 }
 0xc8a   :  { %v4150_v5 = vpop.eup %4149  ;;  %1733 = vadd.xlane.f32.xlu0 %v1732_v4 }
 0xc8b   :  { %v1729_v6 = vsel %vm875_vm3, %v4150_v5, 0.0 }
 0xc8e   :  { %1730 = vadd.xlane.f32.xlu0 %v1729_v6 }
 0xca4   :  { %1741 = vrot.lane.b32.xlu0 %v4833_v41, %s4577_s28 }
 0xd13   :  { %v1734_v42 = vpop.xlane.xlu0 %1733 }
 0xd14   :  { %4151 = vrcp.f32 %v1734_v42 }
 0xd17   :  { %v1731_v7 = vpop.xlane.xlu0 %1730 }
 0xd18   :  { %4153 = vrcp.f32 %v1731_v7 }
 0xd1b   :  { %v1742_v9 = vpop.permute.xlu0 %1741 }
 0xd1c   :  { %3863 = vmatprep.subr.mxu1 %v1742_v9 }
 0xd1d   :  { %3864 = vmatpush3.msra.mxu1 %v1742_v9 }
 0xd1e   :  { %3865 = vmatprep.subr.mxu1 %v1740_v11 }
 0xd1f   :  { %3866 = vmatpush3.msra.mxu1 %v1740_v11 }
 0xd20   :  { %3881 = vmatprep.subr.msk.mxu1 %vm253_vm0, %v4942_v12 }
 0xd21   :  { %v4152_v41 = vpop.eup %4151 }
 0xd22   :  { %v1738_v18 = vmul.f32 %v4152_v41, %v4148_v3 }
 0xd25   :  { %v4154_v16 = vpop.eup %4153 }
 0xd26   :  { %v1737_v26 = vmul.f32 %v4154_v16, %v4150_v5  ;;  %v779_v16 = vld [vmem:[#allocation13 + $0xb8] sm:$0xff] }
 0xd28   :  { %3867 = vmatprep.mubr.msk.f32.mxu1 %vm875_vm3, %v1737_v26  ;;  %v778_v26 = vld [vmem:[#allocation13 + $0xb0] sm:$0xff] }
 0xd29   :  { %3868 = vmatmul.mubr.msk.f32.vlgmr.msra.gmra.mxu1 %vm875_vm3, %v1738_v18 }
 0xd2a   :  { %3882 = vmatpush3.xpose.msk.msra.mxu1 %vm253_vm0, %v4942_v12  ;;  %3885 = vmatprep.mubr.msk.f32.mxu1 %vm253_vm0, %v4949_v28 }
 0xd2b   :  { %3883 = vmatprep.subr.msk.mxu1 %vm253_vm0, %v4953_v44 }
 0xd2e   :  { %3884 = vmatpush3.xpose.msk.msra.mxu1 %vm253_vm0, %v4953_v44 }
 0xd2f   :  { %3895 = vmatprep.subr.mxu1 %v775_v45 }
 0xd31   :  { %3886 = vmatmul.mubr.msk.f32.vlgmr.msra.gmra.mxu1 %vm253_vm0, %v4965_v15 }
 0xd32   :  { %3896 = vmatpush3.msra.mxu1 %v775_v45 }
 0xd33   :  { %3897 = vmatprep.subr.mxu1 %v774_v46 }
 0xd34   :  { %3898 = vmatpush3.msra.mxu1 %v774_v46 }
 0xd35   :  { %3899 = vmatprep.subr.mxu1 %v773_v34 }
 0xd36   :  { %3900 = vmatpush3.msra.mxu1 %v773_v34  ;;  %v782_v34 = vld [vmem:[#allocation13 + $0xd0] sm:$0xff] }
 0xd37   :  { %3901 = vmatprep.subr.mxu1 %v772_v60 }
 0xd38   :  { %3902 = vmatpush3.msra.mxu1 %v772_v60 }
 0xde9   :  { %v3869_v17 = vpop.f32.mrf.mxu1 }
 0xdeb   :  { %v1817_v23 = vpop.f32.mrf.mxu1 }
 0xdec   :  { %3878 = vmatprep.mubr.msk.f32.mxu0 %vm253_vm0, %v1817_v23 }
 0xded   :  { %3879 = vmatmul.mubr.msk.f32.vlgmr.msra.gmra.mxu0 %vm253_vm0, %v3869_v17 }
 0xdee   :  { %3889 = vmatpush3.msra.mxu0 %v4922_v51 }
 0xdef   :  { %3890 = vmatprep.subr.mxu0 %v4831_v39 }
 0xdf0   :  { %3891 = vmatpush3.msra.mxu0 %v4831_v39 }
 0xdf1   :  { %v3887_v27 = vpop.f32.mrf.mxu1 }
 0xdf2   :  { %v1999_v30 = vsel %vm875_vm3, %v3887_v27, -inf }
 0xdf3   :  { %2000 = vmax.xlane.f32.xlu0 %v1999_v30  ;;  %v1987_v32 = vpop.f32.mrf.mxu1 }
 0xdf4   :  { %v1996_v19 = vsel %vm875_vm3, %v1987_v32, -inf }
 0xdf5   :  { %1997 = vmax.xlane.f32.xlu1 %v1996_v19 }
 0xe7c   :  { %v2001_v20 = vpop.xlane.xlu0 %2000 }
 0xe7d   :  { %v2003_v21 = vsub.f32 %v3887_v27, %v2001_v20 }
 0xe7e   :  { %v1998_v24 = vpop.xlane.xlu1 %1997 }
 0xe7f   :  { %v2006_v25 = vmul.f32 1.442695, %v2003_v21  ;;  %v2002_v29 = vsub.f32 %v1987_v32, %v1998_v24 }
 0xe81   :  { %4155 = vpow2.f32 %v2006_v25  ;;  %v2004_v31 = vmul.f32 1.442695, %v2002_v29 }
 0xe83   :  { %4157 = vpow2.f32 %v2004_v31  ;;  %v777_v31 = vld [vmem:[#allocation13 + $0xa8] sm:$0xff] }
 0xe8e   :  { %v4156_v33 = vpop.eup %4155 }
 0xe8f   :  { %v2011_v22 = vsel %vm875_vm3, %v4156_v33, 0.0 }
 0xe90   :  { %v4158_v36 = vpop.eup %4157  ;;  %2012 = vadd.xlane.f32.xlu1 %v2011_v22 }
 0xe91   :  { %v2008_v37 = vsel %vm875_vm3, %v4158_v36, 0.0 }
 0xe92   :  { %2009 = vadd.xlane.f32.xlu0 %v2008_v37 }
 0xea1   :  { %2186 = vrot.lane.b32.xlu1 %v4953_v44, %s4575_s9 }
 0xea5   :  { %2182 = vrot.lane.b32.xlu1 %v4949_v28, %s4575_s9 }
 0xea8   :  { %2188 = vrot.lane.b32.xlu0 %v4942_v12, %s4575_s9 }
 0xea9   :  { %2184 = vrot.lane.b32.xlu1 %v4965_v15, %s4575_s9 }
 0xead   :  { %v3880_v38 = vpop.f32.mrf.mxu0 }
 0xeae   :  { %v4987_v40 = vadd.f32 %v3880_v38, %v4927_v55 }
 0xeaf   :  { %v4997_v61 = vpop.f32.mrf.mxu0 }
 0xf19   :  { %v2013_v47 = vpop.xlane.xlu1 %2012 }
 0xf1a   :  { %4159 = vrcp.f32 %v2013_v47 }
 0xf1b   :  { %v2010_v48 = vpop.xlane.xlu0 %2009 }
 0xf1c   :  { %4161 = vrcp.f32 %v2010_v48 }
 0xf1d   :  { %v2187_v52 = vpop.permute.xlu1 %2186 }
 0xf1f   :  { %v2189_v49 = vpop.permute.xlu0 %2188 }
 0xf20   :  { %3906 = vmatprep.subr.msk.mxu0 %vm253_vm0, %v2189_v49 }
 0xf21   :  { %v2183_v55 = vpop.permute.xlu1 %2182 }
 0xf25   :  { %v2185_v59 = vpop.permute.xlu1 %2184 }
 0xf27   :  { %v4160_v53 = vpop.eup %4159 }
 0xf28   :  { %v2017_v58 = vmul.f32 %v4160_v53, %v4156_v33  ;;  %v776_v33 = vld [vmem:[#allocation13 + $0xa0] sm:$0xff] }
 0xf29   :  { %v4162_v54 = vpop.eup %4161 }
 0xf2a   :  { %v2016_v56 = vmul.f32 %v4162_v54, %v4158_v36 }
 0xf2c   :  { %3892 = vmatprep.mubr.msk.f32.mxu0 %vm875_vm3, %v2016_v56 }
 0xf2d   :  { %3893 = vmatmul.mubr.msk.f32.vlgmr.msra.gmra.mxu0 %vm875_vm3, %v2017_v58 }
 0xf2e   :  { %3907 = vmatpush3.xpose.msk.msra.mxu0 %vm253_vm0, %v2189_v49  ;;  %3910 = vmatprep.mubr.msk.f32.mxu0 %vm253_vm0, %v2183_v55 }
 0xf2f   :  { %3908 = vmatprep.subr.msk.mxu0 %vm253_vm0, %v2187_v52 }
 0xf32   :  { %3909 = vmatpush3.xpose.msk.msra.mxu0 %vm253_vm0, %v2187_v52 }
 0xf33   :  { %3920 = vmatprep.subr.mxu0 %v779_v16 }
 0xf35   :  { %3911 = vmatmul.mubr.msk.f32.vlgmr.msra.gmra.mxu0 %vm253_vm0, %v2185_v59  ;;  %v783_v59 = vld [vmem:[#allocation13 + $0xd8] sm:$0xff] }
 0xf36   :  { %3921 = vmatpush3.msra.mxu0 %v779_v16 }
 0xf37   :  { %3922 = vmatprep.subr.mxu0 %v778_v26 }
 0xf38   :  { %3923 = vmatpush3.msra.mxu0 %v778_v26 }
 0xf39   :  { %3924 = vmatprep.subr.mxu0 %v777_v31 }
 0xf3a   :  { %3925 = vmatpush3.msra.mxu0 %v777_v31 }
 0xf3b   :  { %3926 = vmatprep.subr.mxu0 %v776_v33 }
 0xf3c   :  { %3927 = vmatpush3.msra.mxu0 %v776_v33 }
 0xfed   :  { %v3894_v63 = vpop.f32.mrf.mxu0 }
 0xfef   :  { %v2090_v0 = vpop.f32.mrf.mxu0 }
 0xff0   :  { %3903 = vmatprep.mubr.msk.f32.mxu1 %vm253_vm0, %v2090_v0 }
 0xff1   :  { %3904 = vmatmul.mubr.msk.f32.vlgmr.msra.gmra.mxu1 %vm253_vm0, %v3894_v63 }
 0xff5   :  { %v3912_v62 = vpop.f32.mrf.mxu0 }
 0xff6   :  { %v2276_v1 = vsel %vm875_vm3, %v3912_v62, -inf }
 0xff7   :  { %2277 = vmax.xlane.f32.xlu1 %v2276_v1  ;;  %v2264_v2 = vpop.f32.mrf.mxu0 }
 0xff8   :  { %v2273_v3 = vsel %vm875_vm3, %v2264_v2, -inf }
 0xff9   :  { %2274 = vmax.xlane.f32.xlu0 %v2273_v3 }
0x1008   :  { %2297 = vrot.lane.b32.xlu1 %v4831_v39, %s4575_s9 }
0x100c   :  { %2473 = vrot.lane.b32.xlu1 %v4942_v12, %s4576_s25 }
0x1010   :  { %2471 = vrot.lane.b32.xlu1 %v4953_v44, %s4576_s25 }
0x1014   :  { %2469 = vrot.lane.b32.xlu1 %v4965_v15, %s4576_s25 }
0x1080   :  { %v2278_v4 = vpop.xlane.xlu1 %2277 }
0x1081   :  { %v2280_v5 = vsub.f32 %v3912_v62, %v2278_v4 }
0x1082   :  { %v2275_v6 = vpop.xlane.xlu0 %2274 }
0x1083   :  { %v2283_v42 = vmul.f32 1.442695, %v2280_v5  ;;  %v2279_v7 = vsub.f32 %v2264_v2, %v2275_v6 }
0x1084   :  { %v2298_v23 = vpop.permute.xlu1 %2297 }
0x1085   :  { %4163 = vpow2.f32 %v2283_v42  ;;  %v2281_v8 = vmul.f32 1.442695, %v2279_v7  ;;  %v781_v7 = vld [vmem:[#allocation13 + $0xc8] sm:$0xff] }
0x1087   :  { %4165 = vpow2.f32 %v2281_v8  ;;  %v780_v8 = vld [vmem:[#allocation13 + $0xc0] sm:$0xff] }
0x1088   :  { %v2474_v30 = vpop.permute.xlu1 %2473 }
0x108c   :  { %v2472_v25 = vpop.permute.xlu1 %2471 }
0x1090   :  { %v2470_v29 = vpop.permute.xlu1 %2469 }
0x1092   :  { %v4164_v9 = vpop.eup %4163 }
0x1093   :  { %v2288_v10 = vsel %vm875_vm3, %v4164_v9, 0.0 }
0x1094   :  { %v4166_v11 = vpop.eup %4165  ;;  %2289 = vadd.xlane.f32.xlu0 %v2288_v10 }
0x1095   :  { %v2285_v13 = vsel %vm875_vm3, %v4166_v11, 0.0 }
0x1098   :  { %2286 = vadd.xlane.f32.xlu0 %v2285_v13 }
0x10ae   :  { %2299 = vrot.lane.b32.xlu0 %v4922_v51, %s4575_s9 }
0x10b1   :  { %v3905_v41 = vpop.f32.mrf.mxu1 }
0x10b2   :  { %2467 = vrot.lane.b32.xlu0 %v4949_v28, %s4576_s25  ;;  %v5018_v14 = vadd.f32 %v3905_v41, %v4987_v40 }
0x10b3   :  { %v5028_v22 = vpop.f32.mrf.mxu1 }
0x111d   :  { %v2290_v18 = vpop.xlane.xlu0 %2289 }
0x111e   :  { %4167 = vrcp.f32 %v2290_v18 }
0x1121   :  { %v2287_v17 = vpop.xlane.xlu0 %2286 }
0x1122   :  { %4169 = vrcp.f32 %v2287_v17 }
0x1125   :  { %v2300_v27 = vpop.permute.xlu0 %2299 }
0x1126   :  { %3913 = vmatprep.subr.mxu1 %v2300_v27 }
0x1127   :  { %3914 = vmatpush3.msra.mxu1 %v2300_v27 }
0x1128   :  { %3915 = vmatprep.subr.mxu1 %v2298_v23 }
0x1129   :  { %3916 = vmatpush3.msra.mxu1 %v2298_v23  ;;  %v2468_v24 = vpop.permute.xlu0 %2467 }
0x112a   :  { %3931 = vmatprep.subr.msk.mxu1 %vm253_vm0, %v2474_v30 }
0x112b   :  { %v4168_v32 = vpop.eup %4167 }
0x112c   :  { %v2294_v21 = vmul.f32 %v4168_v32, %v4164_v9 }
0x112f   :  { %v4170_v19 = vpop.eup %4169 }
0x1130   :  { %v2293_v20 = vmul.f32 %v4170_v19, %v4166_v11 }
0x1132   :  { %3917 = vmatprep.mubr.msk.f32.mxu1 %vm875_vm3, %v2293_v20 }
0x1133   :  { %3918 = vmatmul.mubr.msk.f32.vlgmr.msra.gmra.mxu1 %vm875_vm3, %v2294_v21 }
0x1134   :  { %3932 = vmatpush3.xpose.msk.msra.mxu1 %vm253_vm0, %v2474_v30  ;;  %3935 = vmatprep.mubr.msk.f32.mxu1 %vm253_vm0, %v2468_v24 }
0x1135   :  { %3933 = vmatprep.subr.msk.mxu1 %vm253_vm0, %v2472_v25 }
0x1138   :  { %3934 = vmatpush3.xpose.msk.msra.mxu1 %vm253_vm0, %v2472_v25  ;;  %v787_v25 = vld [vmem:[#allocation13 + $0xf8] sm:$0xff] }
0x1139   :  { %3945 = vmatprep.subr.mxu1 %v783_v59 }
0x113b   :  { %3936 = vmatmul.mubr.msk.f32.vlgmr.msra.gmra.mxu1 %vm253_vm0, %v2470_v29  ;;  %v786_v29 = vld [vmem:[#allocation13 + $0xf0] sm:$0xff] }
0x113c   :  { %3946 = vmatpush3.msra.mxu1 %v783_v59 }
0x113d   :  { %3947 = vmatprep.subr.mxu1 %v782_v34 }
0x113e   :  { %3948 = vmatpush3.msra.mxu1 %v782_v34 }
0x113f   :  { %3949 = vmatprep.subr.mxu1 %v781_v7 }
0x1140   :  { %3950 = vmatpush3.msra.mxu1 %v781_v7  ;;  %v3094_v7 = vld [vmem:[%s5237_s12 + $0x48] sm:$0xff] }
0x1141   :  { %3951 = vmatprep.subr.mxu1 %v780_v8 }
0x1142   :  { %3952 = vmatpush3.msra.mxu1 %v780_v8  ;;  %v3093_v8 = vld [vmem:[%s5237_s12 + $0x40] sm:$0xff] }
0x11f3   :  { %v3919_v36 = vpop.f32.mrf.mxu1 }
0x11f5   :  { %v2375_v37 = vpop.f32.mrf.mxu1 }
0x11f6   :  { %3928 = vmatprep.mubr.msk.f32.mxu0 %vm253_vm0, %v2375_v37 }
0x11f7   :  { %3929 = vmatmul.mubr.msk.f32.vlgmr.msra.gmra.mxu0 %vm253_vm0, %v3919_v36 }
0x11fb   :  { %v3937_v38 = vpop.f32.mrf.mxu1 }
0x11fc   :  { %v2561_v40 = vsel %vm875_vm3, %v3937_v38, -inf }
0x11fd   :  { %2562 = vmax.xlane.f32.xlu1 %v2561_v40  ;;  %v2549_v45 = vpop.f32.mrf.mxu1 }
0x11fe   :  { %v2558_v46 = vsel %vm875_vm3, %v2549_v45, -inf }
0x11ff   :  { %2559 = vmax.xlane.f32.xlu0 %v2558_v46  ;;  %v785_v46 = vld [vmem:[#allocation13 + $0xe8] sm:$0xff] }
0x120e   :  { %2580 = vrot.lane.b32.xlu1 %v4831_v39, %s4576_s25 }
0x1212   :  { %2756 = vrot.lane.b32.xlu1 %v4942_v12, %s4577_s28 }
0x1216   :  { %2754 = vrot.lane.b32.xlu1 %v4953_v44, %s4577_s28 }
0x121a   :  { %2752 = vrot.lane.b32.xlu1 %v4965_v15, %s4577_s28 }
0x1286   :  { %v2563_v47 = vpop.xlane.xlu1 %2562 }
0x1287   :  { %v2565_v48 = vsub.f32 %v3937_v38, %v2563_v47  ;;  %v784_v47 = vld [vmem:[#allocation13 + $0xe0] sm:$0xff] }
0x1288   :  { %v2560_v49 = vpop.xlane.xlu0 %2559 }
0x1289   :  { %v2568_v52 = vmul.f32 1.442695, %v2565_v48  ;;  %v2564_v53 = vsub.f32 %v2549_v45, %v2560_v49 }
0x128a   :  { %v2581_v0 = vpop.permute.xlu1 %2580 }
0x128b   :  { %4171 = vpow2.f32 %v2568_v52  ;;  %v2566_v54 = vmul.f32 1.442695, %v2564_v53  ;;  %v1907_v53 = vadd.f32 %v4997_v61, %v4929_v57  ;;  %v3100_v57 = vld [vmem:[%s5237_s12 + $0x78] sm:$0xff]  ;;  %v3099_v61 = vld [vmem:[%s5237_s12 + $0x70] sm:$0xff] }
0x128d   :  { %4173 = vpow2.f32 %v2566_v54  ;;  %v2180_v54 = vadd.f32 %v5028_v22, %v1907_v53  ;;  %v3098_v22 = vld [vmem:[%s5237_s12 + $0x68] sm:$0xff] }
0x128e   :  { %v2757_v1 = vpop.permute.xlu1 %2756 }
0x1292   :  { %v2755_v6 = vpop.permute.xlu1 %2754 }
0x1296   :  { %v2753_v42 = vpop.permute.xlu1 %2752 }
0x1298   :  { %v4172_v56 = vpop.eup %4171 }
0x1299   :  { %v2573_v58 = vsel %vm875_vm3, %v4172_v56, 0.0 }
0x129a   :  { %v4174_v55 = vpop.eup %4173  ;;  %2574 = vadd.xlane.f32.xlu0 %v2573_v58 }
0x129b   :  { %v2570_v12 = vsel %vm875_vm3, %v4174_v55, 0.0 }
0x129e   :  { %2571 = vadd.xlane.f32.xlu0 %v2570_v12 }
0x12b4   :  { %2582 = vrot.lane.b32.xlu0 %v4922_v51, %s4576_s25 }
0x12b7   :  { %v3930_v44 = vpop.f32.mrf.mxu0 }
0x12b8   :  { %2750 = vrot.lane.b32.xlu0 %v4949_v28, %s4577_s28  ;;  %v5049_v15 = vadd.f32 %v3930_v44, %v5018_v14 }
0x12b9   :  { %v5059_v9 = vpop.f32.mrf.mxu0 }
0x1323   :  { %v2575_v60 = vpop.xlane.xlu0 %2574 }
0x1324   :  { %4175 = vrcp.f32 %v2575_v60 }
0x1327   :  { %v2572_v63 = vpop.xlane.xlu0 %2571 }
0x1328   :  { %4177 = vrcp.f32 %v2572_v63 }
0x132b   :  { %v2583_v62 = vpop.permute.xlu0 %2582 }
0x132c   :  { %3938 = vmatprep.subr.mxu0 %v2583_v62 }
0x132d   :  { %3939 = vmatpush3.msra.mxu0 %v2583_v62 }
0x132e   :  { %3940 = vmatprep.subr.mxu0 %v2581_v0 }
0x132f   :  { %3941 = vmatpush3.msra.mxu0 %v2581_v0  ;;  %v2751_v5 = vpop.permute.xlu0 %2750 }
0x1330   :  { %3956 = vmatprep.subr.msk.mxu0 %vm253_vm0, %v2757_v1 }
0x1331   :  { %v4176_v28 = vpop.eup %4175 }
0x1332   :  { %v2579_v4 = vmul.f32 %v4176_v28, %v4172_v56  ;;  %v2465_v56 = vadd.f32 %v5059_v9, %v2180_v54  ;;  %v3092_v9 = vld [vmem:[%s5237_s12 + $0x38] sm:$0xff] }
0x1335   :  { %v4178_v2 = vpop.eup %4177 }
0x1336   :  { %v2578_v3 = vmul.f32 %v4178_v2, %v4174_v55  ;;  %v3586_v55 = vld [vmem:[#allocation14] ss:$0 sm:$0xff] }
0x1338   :  { %3942 = vmatprep.mubr.msk.f32.mxu0 %vm875_vm3, %v2578_v3 }
0x1339   :  { %3943 = vmatmul.mubr.msk.f32.vlgmr.msra.gmra.mxu0 %vm875_vm3, %v2579_v4 }
0x133a   :  { %3957 = vmatpush3.xpose.msk.msra.mxu0 %vm253_vm0, %v2757_v1  ;;  %3960 = vmatprep.mubr.msk.f32.mxu0 %vm253_vm0, %v2751_v5  ;;  %v3097_v5 = vld [vmem:[%s5237_s12 + $0x60] sm:$0xff] }
0x133b   :  { %3958 = vmatprep.subr.msk.mxu0 %vm253_vm0, %v2755_v6 }
0x133e   :  { %3959 = vmatpush3.xpose.msk.msra.mxu0 %vm253_vm0, %v2755_v6  ;;  %v3096_v6 = vld [vmem:[%s5237_s12 + $0x58] sm:$0xff] }
0x133f   :  { %3970 = vmatprep.subr.mxu0 %v787_v25 }
0x1341   :  { %3961 = vmatmul.mubr.msk.f32.vlgmr.msra.gmra.mxu0 %vm253_vm0, %v2753_v42  ;;  %v3095_v42 = vld [vmem:[%s5237_s12 + $0x50] sm:$0xff] }
0x1342   :  { %3971 = vmatpush3.msra.mxu0 %v787_v25 }
0x1343   :  { %3972 = vmatprep.subr.mxu0 %v786_v29 }
0x1344   :  { %3973 = vmatpush3.msra.mxu0 %v786_v29  ;;  %v3588_v29 = vld [vmem:[#allocation17] ss:$0 sm:$0xff] }
0x1345   :  { %3974 = vmatprep.subr.mxu0 %v785_v46 }
0x1346   :  { %3975 = vmatpush3.msra.mxu0 %v785_v46 }
0x1347   :  { %3976 = vmatprep.subr.mxu0 %v784_v47 }
0x1348   :  { %3977 = vmatpush3.msra.mxu0 %v784_v47 }
0x1349   :  { %4016 = vmatprep.subr.mxu0 %v4574_v35 }
0x13f9   :  { %v3944_v10 = vpop.f32.mrf.mxu0 }
0x13fb   :  { %v2658_v11 = vpop.f32.mrf.mxu0 }
0x13fc   :  { %3953 = vmatprep.mubr.msk.f32.mxu1 %vm253_vm0, %v2658_v11  ;;  %v3090_v11 = vld [vmem:[%s5237_s12 + $0x28] sm:$0xff] }
0x13fd   :  { %3954 = vmatmul.mubr.msk.f32.vlgmr.msra.gmra.mxu1 %vm253_vm0, %v3944_v10  ;;  %v3091_v10 = vld [vmem:[%s5237_s12 + $0x30] sm:$0xff] }
0x1401   :  { %v3962_v13 = vpop.f32.mrf.mxu0 }
0x1402   :  { %v2844_v41 = vsel %vm875_vm3, %v3962_v13, -inf }
0x1403   :  { %2845 = vmax.xlane.f32.xlu1 %v2844_v41  ;;  %v2832_v14 = vpop.f32.mrf.mxu0  ;;  %v3088_v41 = vld [vmem:[%s5237_s12 + $0x18] sm:$0xff] }
0x1404   :  { %v2841_v16 = vsel %vm875_vm3, %v2832_v14, -inf }
0x1405   :  { %2842 = vmax.xlane.f32.xlu0 %v2841_v16  ;;  %v3086_v16 = vld [vmem:[%s5237_s12 + $0x8] sm:$0xff] }
0x1414   :  { %2863 = vrot.lane.b32.xlu1 %v4831_v39, %s4577_s28 }
0x148c   :  { %v2846_v26 = vpop.xlane.xlu1 %2845 }
0x148d   :  { %v2848_v18 = vsub.f32 %v3962_v13, %v2846_v26  ;;  %v3089_v13 = vld [vmem:[%s5237_s12 + $0x20] sm:$0xff] }
0x148e   :  { %v2843_v17 = vpop.xlane.xlu0 %2842  ;;  %v3085_v26 = vld [vmem:[%s5237_s12] sm:$0xff] }
0x148f   :  { %v2851_v23 = vmul.f32 1.442695, %v2848_v18  ;;  %v2847_v27 = vsub.f32 %v2832_v14, %v2843_v17  ;;  %v3087_v14 = vld [vmem:[%s5237_s12 + $0x10] sm:$0xff] }
0x1490   :  { %v2864_v37 = vpop.permute.xlu1 %2863 }
0x1491   :  { %4179 = vpow2.f32 %v2851_v23  ;;  %v2849_v30 = vmul.f32 1.442695, %v2847_v27 }
0x1493   :  { %4181 = vpow2.f32 %v2849_v30 }
0x149e   :  { %v4180_v32 = vpop.eup %4179 }
0x149f   :  { %v2856_v19 = vsel %vm875_vm3, %v4180_v32, 0.0 }
0x14a0   :  { %v4182_v20 = vpop.eup %4181  ;;  %2857 = vadd.xlane.f32.xlu0 %v2856_v19 }
0x14a1   :  { %v2853_v21 = vsel %vm875_vm3, %v4182_v20, 0.0 }
0x14a4   :  { %2854 = vadd.xlane.f32.xlu0 %v2853_v21 }
0x14ba   :  { %2865 = vrot.lane.b32.xlu0 %v4922_v51, %s4577_s28 }
0x14bd   :  { %v3955_v39 = vpop.f32.mrf.mxu1 }
0x14be   :  { %v2749_v24 = vadd.f32 %v3955_v39, %v5049_v15 }
0x14bf   :  { %v2739_v48 = vpop.f32.mrf.mxu1 }
0x14c0   :  { %v2748_v12 = vadd.f32 %v2739_v48, %v2465_v56 }
0x1529   :  { %v2858_v31 = vpop.xlane.xlu0 %2857 }
0x152a   :  { %4183 = vrcp.f32 %v2858_v31 }
0x152d   :  { %v2855_v33 = vpop.xlane.xlu0 %2854 }
0x152e   :  { %4185 = vrcp.f32 %v2855_v33 }
0x1531   :  { %v2866_v36 = vpop.permute.xlu0 %2865 }
0x1532   :  { %3963 = vmatprep.subr.mxu1 %v2866_v36 }
0x1533   :  { %3964 = vmatpush3.msra.mxu1 %v2866_v36 }
0x1534   :  { %3965 = vmatprep.subr.mxu1 %v2864_v37 }
0x1535   :  { %3966 = vmatpush3.msra.mxu1 %v2864_v37  ;;  %v3589_v37 = vld [vmem:[#allocation19] ss:$0 sm:$0xff] }
0x1536   :  { %3981 = vmatprep.subr.mxu1 %v3100_v57 }
0x1537   :  { %v4184_v51 = vpop.eup %4183 }
0x1538   :  { %v2862_v45 = vmul.f32 %v4184_v51, %v4180_v32 }
0x153b   :  { %v4186_v38 = vpop.eup %4185 }
0x153c   :  { %v2861_v40 = vmul.f32 %v4186_v38, %v4182_v20  ;;  %v3587_v20 = vld [vmem:[#allocation16] ss:$0 sm:$0xff] }
0x153e   :  { %3967 = vmatprep.mubr.msk.f32.mxu1 %vm875_vm3, %v2861_v40 }
0x153f   :  { %3968 = vmatmul.mubr.msk.f32.vlgmr.msra.gmra.mxu1 %vm875_vm3, %v2862_v45 }
0x1540   :  { %3982 = vmatpush3.msra.mxu1 %v3100_v57 }
0x1541   :  { %3983 = vmatprep.subr.mxu1 %v3099_v61 }
0x1542   :  { %3984 = vmatpush3.msra.mxu1 %v3099_v61 }
0x1543   :  { %3985 = vmatprep.subr.mxu1 %v3098_v22 }
0x1544   :  { %3986 = vmatpush3.msra.mxu1 %v3098_v22 }
0x1545   :  { %3987 = vmatprep.subr.mxu1 %v3097_v5 }
0x1546   :  { %3988 = vmatpush3.msra.mxu1 %v3097_v5  ;;  %v3301_v5 = vld [vmem:[#allocation22 + $0x58] sm:$0xff] }
0x1547   :  { %3989 = vmatprep.subr.mxu1 %v3096_v6 }
0x1548   :  { %3990 = vmatpush3.msra.mxu1 %v3096_v6  ;;  %v3300_v6 = vld [vmem:[#allocation22 + $0x50] sm:$0xff] }
0x1549   :  { %3991 = vmatprep.subr.mxu1 %v3095_v42 }
0x154a   :  { %3992 = vmatpush3.msra.mxu1 %v3095_v42  ;;  %v3299_v42 = vld [vmem:[#allocation22 + $0x48] sm:$0xff] }
0x154b   :  { %3993 = vmatprep.subr.mxu1 %v3094_v7 }
0x154c   :  { %3994 = vmatpush3.msra.mxu1 %v3094_v7  ;;  %v3298_v7 = vld [vmem:[#allocation22 + $0x40] sm:$0xff] }
0x154d   :  { %3995 = vmatprep.subr.mxu1 %v3093_v8 }
0x154e   :  { %3996 = vmatpush3.msra.mxu1 %v3093_v8  ;;  %v3297_v8 = vld [vmem:[#allocation22 + $0x38] sm:$0xff] }
0x154f   :  { %3997 = vmatprep.subr.mxu1 %v3092_v9 }
0x1550   :  { %3998 = vmatpush3.msra.mxu1 %v3092_v9  ;;  %v3296_v9 = vld [vmem:[#allocation22 + $0x30] sm:$0xff] }
0x1551   :  { %3999 = vmatprep.subr.mxu1 %v3091_v10 }
0x1552   :  { %4000 = vmatpush3.msra.mxu1 %v3091_v10  ;;  %v3295_v10 = vld [vmem:[#allocation22 + $0x28] sm:$0xff] }
0x1553   :  { %4001 = vmatprep.subr.mxu1 %v3090_v11 }
0x1554   :  { %4002 = vmatpush3.msra.mxu1 %v3090_v11  ;;  %v3294_v11 = vld [vmem:[#allocation22 + $0x20] sm:$0xff] }
0x1555   :  { %4003 = vmatprep.subr.mxu1 %v3089_v13 }
0x1556   :  { %4004 = vmatpush3.msra.mxu1 %v3089_v13  ;;  %v3293_v13 = vld [vmem:[#allocation22 + $0x18] sm:$0xff] }
0x1557   :  { %4005 = vmatprep.subr.mxu1 %v3088_v41 }
0x1558   :  { %4006 = vmatpush3.msra.mxu1 %v3088_v41  ;;  %v3292_v41 = vld [vmem:[#allocation22 + $0x10] sm:$0xff] }
0x1559   :  { %4007 = vmatprep.subr.mxu1 %v3087_v14 }
0x155a   :  { %4008 = vmatpush3.msra.mxu1 %v3087_v14  ;;  %v3291_v14 = vld [vmem:[#allocation22 + $0x8] sm:$0xff] }
0x155b   :  { %4009 = vmatprep.subr.mxu1 %v3086_v16 }
0x155c   :  { %4010 = vmatpush3.msra.mxu1 %v3086_v16  ;;  %v3290_v16 = vld [vmem:[#allocation22] sm:$0xff] }
0x155d   :  { %4011 = vmatprep.subr.mxu1 %v3085_v26 }
0x155e   :  { %4012 = vmatpush3.msra.mxu1 %v3085_v26  ;;  %v3399_v26 = vld [vmem:[%s5242_s17 + $0x78] sm:$0xff] }
0x155f   :  { %4058 = vmatprep.subr.mxu1 %v4574_v35 }
0x15ff   :  { %v3969_v49 = vpop.f32.mrf.mxu1 }
0x1601   :  { %v2941_v52 = vpop.f32.mrf.mxu1 }
0x1602   :  { %3978 = vmatprep.mubr.msk.f32.mxu0 %vm253_vm0, %v2941_v52 }
0x1603   :  { %3979 = vmatmul.mubr.msk.f32.vlgmr.msra.gmra.mxu0 %vm253_vm0, %v3969_v49 }
0x1604   :  { %4020 = vmatprep.mubr.msk.f32.mxu0 %vm4578_vm4, %v4574_v35 }
0x16c3   :  { %v3980_v58 = vpop.f32.mrf.mxu0 }
0x16c4   :  { %v3032_v44 = vadd.f32 %v3980_v58, %v2749_v24 }
0x16c5   :  { %v3022_v15 = vpop.f32.mrf.mxu0 }
0x16c6   :  { %v3041_v59 = vadd.f32 %v3586_v55, %v3032_v44  ;;  %v3031_v34 = vadd.f32 %v3022_v15, %v2748_v12 }
0x16c8   :  { %v3040_v60 = vadd.f32 %v3586_v55, %v3031_v34  ;;  %v3045_v63 = vadd.f32 %v3041_v59, %v4781_v50 }
0x16ca   :  { %3048 = vadd.xlane.f32.xlu0 %v3045_v63  ;;  %v3044_v0 = vadd.f32 %v3040_v60, %v4776_v43 }
0x16cc   :  { %3046 = vadd.xlane.f32.xlu1 %v3044_v0 }
0x1753   :  { %v3049_v43 = vpop.xlane.xlu0 %3048 }
0x1754   :  { %v3052_v50 = vmul.f32 0.0078125, %v3049_v43 }
0x1755   :  { %v3047_v62 = vpop.xlane.xlu1 %3046 }
0x1756   :  { %v3054_v1 = vsub.f32 %v3045_v63, %v3052_v50  ;;  %v3051_v28 = vmul.f32 0.0078125, %v3047_v62 }
0x1758   :  { %v3053_v2 = vsub.f32 %v3044_v0, %v3051_v28  ;;  %v3056_v3 = vmul.f32 %v3054_v1, %v3054_v1  ;;  %v3305_v28 = vld [vmem:[#allocation22 + $0x78] sm:$0xff] }
0x175a   :  { %3059 = vadd.xlane.f32.xlu1 %v3056_v3  ;;  %v3055_v4 = vmul.f32 %v3053_v2, %v3053_v2  ;;  %v3303_v3 = vld [vmem:[#allocation22 + $0x68] sm:$0xff] }
0x175c   :  { %3057 = vadd.xlane.f32.xlu0 %v3055_v4  ;;  %v3302_v4 = vld [vmem:[#allocation22 + $0x60] sm:$0xff] }
0x17e3   :  { %v3060_v18 = vpop.xlane.xlu1 %3059 }
0x17e4   :  { %v3062_v17 = vmul.f32 0.0078125, %v3060_v18  ;;  %v3398_v18 = vld [vmem:[%s5242_s17 + $0x70] sm:$0xff] }
0x17e5   :  { %v3058_v23 = vpop.xlane.xlu0 %3057 }
0x17e6   :  { %v3064_v27 = vadd.f32 1e-05, %v3062_v17  ;;  %v3061_v30 = vmul.f32 0.0078125, %v3058_v23  ;;  %v3397_v17 = vld [vmem:[%s5242_s17 + $0x68] sm:$0xff]  ;;  %v3396_v23 = vld [vmem:[%s5242_s17 + $0x60] sm:$0xff] }
0x17e8   :  { %4187 = vrsqrt.f32 %v3064_v27  ;;  %v3063_v32 = vadd.f32 1e-05, %v3061_v30  ;;  %v3395_v27 = vld [vmem:[%s5242_s17 + $0x58] sm:$0xff]  ;;  %v3394_v30 = vld [vmem:[%s5242_s17 + $0x50] sm:$0xff] }
0x17ea   :  { %4189 = vrsqrt.f32 %v3063_v32  ;;  %v3393_v32 = vld [vmem:[%s5242_s17 + $0x48] sm:$0xff] }
0x17f5   :  { %v4188_v19 = vpop.eup %4187 }
0x17f6   :  { %v3068_v21 = vmul.f32 %v4188_v19, %v3054_v1  ;;  %v3215_v1 = vld [vmem:[#allocation20] sm:$0x1f]  ;;  %v3392_v19 = vld [vmem:[%s5242_s17 + $0x40] sm:$0xff] }
0x17f7   :  { %v4190_v39 = vpop.eup %4189 }
0x17f8   :  { %v3067_v24 = vmul.f32 %v4190_v39, %v3053_v2  ;;  %v3076_v25 = vmul.f32 %v3587_v20, %v3068_v21  ;;  %v3304_v2 = vld [vmem:[#allocation22 + $0x70] sm:$0xff] }
0x17f9   :  { %v3390_v21 = vld [vmem:[%s5242_s17 + $0x30] sm:$0xff]  ;;  %v3389_v39 = vld [vmem:[%s5242_s17 + $0x28] sm:$0xff] }
0x17fa   :  { %v3075_v31 = vmul.f32 %v3587_v20, %v3067_v24  ;;  %v3084_v36 = vadd.f32 %v3588_v29, %v3076_v25  ;;  %v3388_v24 = vld [vmem:[%s5242_s17 + $0x20] sm:$0xff]  ;;  %v3387_v25 = vld [vmem:[%s5242_s17 + $0x18] sm:$0xff] }
0x17fc   :  { %v3083_v33 = vadd.f32 %v3588_v29, %v3075_v31 }
0x17fe   :  { %4013 = vmatprep.mubr.f32.mxu1 %v3083_v33 }
0x17ff   :  { %4014 = vmatmul.mubr.f32.vlgmr.msra.gmra.mxu1 %v3084_v36 }
0x1800   :  { %4090 = vmatprep.mubr.msk.f32.mxu1 %vm4578_vm4, %v4574_v35  ;;  %4059 = vmatpush3.msra.mxu1 %v3399_v26 }
0x1801   :  { %4060 = vmatprep.subr.mxu1 %v4574_v35 }
0x1802   :  { %4061 = vmatpush3.msra.mxu1 %v3398_v18 }
0x1803   :  { %4062 = vmatprep.subr.mxu1 %v4574_v35 }
0x1804   :  { %4063 = vmatpush3.msra.mxu1 %v3397_v17 }
0x1805   :  { %4064 = vmatprep.subr.mxu1 %v4574_v35 }
0x1806   :  { %4065 = vmatpush3.msra.mxu1 %v3396_v23 }
0x1807   :  { %4066 = vmatprep.subr.mxu1 %v4574_v35 }
0x1808   :  { %4067 = vmatpush3.msra.mxu1 %v3395_v27 }
0x1809   :  { %4068 = vmatprep.subr.mxu1 %v4574_v35 }
0x180a   :  { %4069 = vmatpush3.msra.mxu1 %v3394_v30 }
0x180b   :  { %4070 = vmatprep.subr.mxu1 %v4574_v35 }
0x180c   :  { %4071 = vmatpush3.msra.mxu1 %v3393_v32 }
0x180d   :  { %4072 = vmatprep.subr.mxu1 %v4574_v35 }
0x180e   :  { %4073 = vmatpush3.msra.mxu1 %v3392_v19 }
0x180f   :  { %4074 = vmatprep.subr.mxu1 %v4574_v35 }
0x18bf   :  { %v4015_v51 = vpop.f32.mrf.mxu1 }
0x18c0   :  { %v3180_v38 = vadd.f32 %v4015_v51, %v3589_v37  ;;  %v3595_v51 = vld [vmem:[#allocation23] ss:$0 sm:$0xff] }
0x18c1   :  { %v3174_v40 = vpop.f32.mrf.mxu1 }
0x18c2   :  { %v3175_v45 = vadd.f32 %v3589_v37, %v3174_v40  ;;  %v3184_v46 = vadd.f32 %v3180_v38, %v3084_v36  ;;  %v3385_v36 = vld [vmem:[%s5242_s17 + $0x8] sm:$0xff]  ;;  %v3384_v37 = vld [vmem:[%s5242_s17] sm:$0xff] }
0x18c4   :  { %3187 = vadd.xlane.f32.xlu0 %v3184_v46  ;;  %v3183_v47 = vadd.f32 %v3175_v45, %v3083_v33  ;;  %v3386_v33 = vld [vmem:[%s5242_s17 + $0x10] sm:$0xff] }
0x18c6   :  { %3185 = vadd.xlane.f32.xlu1 %v3183_v47 }
0x194d   :  { %v3188_v48 = vpop.xlane.xlu0 %3187 }
0x194e   :  { %v3190_v49 = vmul.f32 0.0078125, %v3188_v48 }
0x194f   :  { %v3186_v52 = vpop.xlane.xlu1 %3185 }
0x1950   :  { %v3192_v53 = vsub.f32 %v3184_v46, %v3190_v49  ;;  %v3189_v54 = vmul.f32 0.0078125, %v3186_v52 }
0x1952   :  { %v3191_v56 = vsub.f32 %v3183_v47, %v3189_v54  ;;  %v3194_v58 = vmul.f32 %v3192_v53, %v3192_v53 }
0x1954   :  { %3197 = vadd.xlane.f32.xlu0 %v3194_v58  ;;  %v3193_v55 = vmul.f32 %v3191_v56, %v3191_v56 }
0x1956   :  { %3195 = vadd.xlane.f32.xlu1 %v3193_v55 }
0x19dd   :  { %v3198_v12 = vpop.xlane.xlu0 %3197 }
0x19de   :  { %v3200_v44 = vmul.f32 0.0078125, %v3198_v12 }
0x19df   :  { %v3196_v15 = vpop.xlane.xlu1 %3195 }
0x19e0   :  { %v3202_v59 = vadd.f32 1e-05, %v3200_v44  ;;  %v3199_v34 = vmul.f32 0.0078125, %v3196_v15 }
0x19e2   :  { %4191 = vrsqrt.f32 %v3202_v59  ;;  %v3201_v60 = vadd.f32 1e-05, %v3199_v34 }
0x19e4   :  { %4193 = vrsqrt.f32 %v3201_v60 }
0x19ef   :  { %v4192_v63 = vpop.eup %4191 }
0x19f0   :  { %v3206_v0 = vmul.f32 %v4192_v63, %v3192_v53 }
0x19f1   :  { %v4194_v57 = vpop.eup %4193 }
0x19f2   :  { %v3208_v61 = vmul.f32 %v3587_v20, %v3206_v0  ;;  %v3205_v22 = vmul.f32 %v4194_v57, %v3191_v56 }
0x19f4   :  { %v3210_v43 = vadd.f32 %v3588_v29, %v3208_v61  ;;  %v3207_v50 = vmul.f32 %v3587_v20, %v3205_v22  ;;  %v3391_v20 = vld [vmem:[%s5242_s17 + $0x38] sm:$0xff] }
0x19f5   :  { %4075 = vmatpush3.msra.mxu1 %v3391_v20 }
0x19f6   :  { %vm3212_vm5 = vcmp.ne.f32.partialorder %v3210_v43, %v3210_v43  ;;  %v3209_v62 = vadd.f32 %v3588_v29, %v3207_v50  ;;  %4076 = vmatprep.subr.mxu1 %v4574_v35 }
0x19f7   :  { %vm3590_vm6 = vmneg %vm3212_vm5  ;;  %4077 = vmatpush3.msra.mxu1 %v3390_v21 }
0x19f8   :  { %4017 = vmatpush3.msk.msra.mxu0 %vm3590_vm6, %v3210_v43  ;;  %vm3211_vm7 = vcmp.ne.f32.partialorder %v3209_v62, %v3209_v62  ;;  %4078 = vmatprep.subr.mxu1 %v4574_v35 }
0x19f9   :  { %4018 = vmatprep.subr.mxu0 %v4574_v35  ;;  %vm3592_vm8 = vmneg %vm3211_vm7  ;;  %4079 = vmatpush3.msra.mxu1 %v3389_v39 }
0x19fa   :  { %4019 = vmatpush3.msk.msra.mxu0 %vm3592_vm8, %v3209_v62  ;;  %4080 = vmatprep.subr.mxu1 %v4574_v35 }
0x19fb   :  { %4021 = vmatmul.mubr.msk.f32.vlgmr.msra.gmra.mxu0 %vm875_vm3, %v3215_v1  ;;  %4023 = vmatprep.subr.mxu0 %v4574_v35 }
0x19fc   :  { %4024 = vmatpush3.msra.mxu0 %v3305_v28  ;;  %4055 = vmatprep.mubr.msk.f32.mxu0 %vm4578_vm4, %v4574_v35 }
0x19fd   :  { %4025 = vmatprep.subr.mxu0 %v4574_v35  ;;  %4081 = vmatpush3.msra.mxu1 %v3388_v24 }
0x19fe   :  { %4026 = vmatpush3.msra.mxu0 %v3304_v2  ;;  %4082 = vmatprep.subr.mxu1 %v4574_v35 }
0x19ff   :  { %4027 = vmatprep.subr.mxu0 %v4574_v35  ;;  %4083 = vmatpush3.msra.mxu1 %v3387_v25 }
0x1a00   :  { %4028 = vmatpush3.msra.mxu0 %v3303_v3  ;;  %4084 = vmatprep.subr.mxu1 %v4574_v35 }
0x1a01   :  { %4029 = vmatprep.subr.mxu0 %v4574_v35  ;;  %4085 = vmatpush3.msra.mxu1 %v3386_v33 }
0x1a02   :  { %4030 = vmatpush3.msra.mxu0 %v3302_v4  ;;  %4086 = vmatprep.subr.mxu1 %v4574_v35 }
0x1a03   :  { %4031 = vmatprep.subr.mxu0 %v4574_v35  ;;  %4087 = vmatpush3.msra.mxu1 %v3385_v36 }
0x1a04   :  { %4032 = vmatpush3.msra.mxu0 %v3301_v5  ;;  %4088 = vmatprep.subr.mxu1 %v4574_v35 }
0x1a05   :  { %4033 = vmatprep.subr.mxu0 %v4574_v35  ;;  %4089 = vmatpush3.msra.mxu1 %v3384_v37 }
0x1a06   :  { %4034 = vmatpush3.msra.mxu0 %v3300_v6 }
0x1a07   :  { %4035 = vmatprep.subr.mxu0 %v4574_v35 }
0x1a08   :  { %4036 = vmatpush3.msra.mxu0 %v3299_v42 }
0x1a09   :  { %4037 = vmatprep.subr.mxu0 %v4574_v35 }
0x1a0a   :  { %4038 = vmatpush3.msra.mxu0 %v3298_v7 }
0x1a0b   :  { %4039 = vmatprep.subr.mxu0 %v4574_v35 }
0x1a0c   :  { %4040 = vmatpush3.msra.mxu0 %v3297_v8 }
0x1a0d   :  { %4041 = vmatprep.subr.mxu0 %v4574_v35 }
0x1a0e   :  { %4042 = vmatpush3.msra.mxu0 %v3296_v9 }
0x1a0f   :  { %4043 = vmatprep.subr.mxu0 %v4574_v35 }
0x1a10   :  { %4044 = vmatpush3.msra.mxu0 %v3295_v10 }
0x1a11   :  { %4045 = vmatprep.subr.mxu0 %v4574_v35 }
0x1a12   :  { %4046 = vmatpush3.msra.mxu0 %v3294_v11 }
0x1a13   :  { %4047 = vmatprep.subr.mxu0 %v4574_v35 }
0x1a14   :  { %4048 = vmatpush3.msra.mxu0 %v3293_v13 }
0x1a15   :  { %4049 = vmatprep.subr.mxu0 %v4574_v35 }
0x1a16   :  { %4050 = vmatpush3.msra.mxu0 %v3292_v41 }
0x1a17   :  { %4051 = vmatprep.subr.mxu0 %v4574_v35 }
0x1a18   :  { %4052 = vmatpush3.msra.mxu0 %v3291_v14 }
0x1a19   :  { %4053 = vmatprep.subr.mxu0 %v4574_v35 }
0x1a1a   :  { %4054 = vmatpush3.msra.mxu0 %v3290_v16 }
0x1abb   :  { %v3285_v29 = vpop.f32.mrf.mxu0 }
0x1abc   :  { %3289 = vst [vmem:[#allocation26] sm:$0x1f] %v3285_v29  ;;  %4056 = vmatmul.mubr.f32.vlgmr.msra.gmra.mxu0 %v3285_v29 }
0x1abd   :  { %v4022_v31 = vpop.f32.mrf.mxu0 }
0x1b7c   :  { %v3379_v38 = vpop.f32.mrf.mxu0 }
0x1b7d   :  { %v3380_v40 = vadd.f32 %v3595_v51, %v3379_v38 }
0x1b7e   :  { %v4057_v45 = vpop.f32.mrf.mxu0 }
0x1b7f   :  { %v3383_v46 = vmax.f32 %v3380_v40, 0.0 }
0x1b81   :  { %4091 = vmatmul.mubr.f32.vlgmr.msra.gmra.mxu1 %v3383_v46 }
0x1b82   :  { %4506 = shalt.err (!%p4503_p9)
}
0x1b83   :  { %3490 = dma.vmem_to_hbm [thread:$0]  %s3488_s13, 128, %s5244_s19, [#allocation4]   ;;  %v3596_v35 = vld [vmem:[#allocation25] ss:$0 sm:$0xff]  ;;  %vm3479_vm9 = vcmask 45056  }
0x1b84   :  { %s4580_s17 = smov [#allocation27]  }
0x1b85   :  { %s3497_s18 = sshll.u32 %s4580_s17, 4  ;;  %s3498_s18 = int_to_ptr.vmem [resolvable:$true] %s3497_s18 }
0x1b86   :  { %s4515_s30 = scalar_lea.vmem %s3498_s18, 128  ;;  %p4520_p11 = scmp.lt.s32.totalorder %s3498_s18, %s3498_s18 }
0x1b87   :  { %p4516_p10 = scmp.ne.s32.totalorder %s3498_s18, %s4515_s30  ;;  %p4521_p12 = scmp.lt.s32.totalorder %s4515_s30, %s4515_s30 }
0x1b89   :  { %p4522_p13 = por %p4521_p12, %p4520_p11 }
0x1b8b   :  { %p4523_p0 = pnand %p4522_p13, %p4516_p10 }
0x1c41   :  { %v3473_v47 = vpop.f32.mrf.mxu1 }
0x1c42   :  { %v3474_v48 = vadd.f32 %v3596_v35, %v3473_v47 }
0x1c43   :  { %v4092_v49 = vpop.f32.mrf.mxu1 }
0x1c44   :  { %vm3477_vm10 = vcmp.ne.f32.partialorder %v3474_v48, %v3474_v48 }
0x1c45   :  { %v3478_v52 = vsel %vm3477_vm10, 0.0, %v3474_v48 }
0x1c46   :  { %3480 = vst.msk [vmem:[#allocation27] sm:$0x1f] %vm3479_vm9, %v3478_v52 }
0x1c47   :  { %4526 = shalt.err (!%p4523_p0)
}
0x1c48   :  { %3500 = dma.vmem_to_hbm [thread:$0]  %s3498_s18, 128, %s5245_s20, [#allocation28]  }
0x1c49   :  { %4551 = dma.done.wait [#allocation4], 128  }
0x1c4a   :  { %4552 = vsyncadd [#allocation4], 4294967168 }
0x1c4b   :  { %4553 = dma.done.wait [#allocation28], 128  }
0x1c4c   :  { %4554 = vsyncadd [#allocation28], 4294967168 }
0x1c4d   :  { %3507 = vsyncpa [#allocation3], 1 }
0x1c4e   :  { %3508 = vsyncpa [#allocation6], 1 }
0x1c4f   :  { %3509 = vsyncpa [#allocation9], 1 }
0x1c50   :  { %3510 = vsyncpa [#allocation12], 1 }
0x1c51   :  { %3511 = vsyncpa [#allocation15], 1 }
0x1c52   :  { %3512 = vsyncpa [#allocation18], 1 }
0x1c53   :  { %3513 = vsyncpa [#allocation21], 1 }
0x1c54   :  { %3514 = vsyncpa [#allocation24], 1 }
0x1c55   :  { %3515 = vsyncpa [#allocation4], 1 }
0x1c56   :  { %3516 = vsyncpa [#allocation28], 1 }

</bundles_post_ra>
